<compile_context>
chip_gen: v7x
topology: tpu7x:2x2x1
jax: 0.10.0
libtpu: 0.0.40
codegen_flags: <defaults>
</compile_context>

<pallas_src>
import functools
import numpy as np
import jax
import jax.numpy as jnp
from jax import lax
from jax.experimental import pallas as pl
from jax.experimental.pallas import tpu as pltpu


def _round_up(x, m):
    return (x + m - 1) // m * m


def _vmem_limit(*arrays):
    # Crude (over-)estimate of operand footprint + headroom; explicit so
    # production-size weight slabs don't trip the 16/32 MiB default scoped
    # VMEM limit, clamped to stay inside v7x's 64 MiB physical VMEM.
    total = sum(int(np.prod(a.shape)) * a.dtype.itemsize for a in arrays)
    return int(min(max(4 * total, 8 << 20), 64 << 20))


def _const_spec(shape):
    """BlockSpec for an operand whose block never changes across the grid.

    Single-buffered (pl.Buffered(1)) so it is not needlessly double-buffered;
    falls back to a plain BlockSpec if pipeline_mode is unavailable.
    """
    zeros = (0,) * len(shape)
    imap = lambda *_: zeros
    try:
        return pl.BlockSpec(shape, imap, pipeline_mode=pl.Buffered(1))
    except (TypeError, AttributeError):
        return pl.BlockSpec(shape, imap)


# --------------------------- in-kernel math helpers ---------------------------

def _ln(x, g, b):
    mu = jnp.mean(x, axis=-1, keepdims=True)
    var = jnp.mean(jnp.square(x - mu), axis=-1, keepdims=True)
    return (x - mu) * lax.rsqrt(var + 1e-5) * g + b


def _lane_roll(x, shift):
    """Static rotate along the last (lane) axis: out[..., j] = x[..., (j - shift) % n]."""
    # TODO(synk): swap to pltpu.roll (XLU slot) once interpreter portability is
    # not required; the static slice+concat form lowers everywhere.
    n = x.shape[-1]
    shift = shift % n
    if shift == 0:
        return x
    return jnp.concatenate([x[..., n - shift:], x[..., :n - shift]], axis=-1)


def _rotate_half(x):
    """Interleaved rotate_half: per pair (x0, x1) -> (-x1, x0)."""
    n = x.shape[-1]
    even = (lax.broadcasted_iota(
        jnp.int32, (1,) * (x.ndim - 1) + (n,), x.ndim - 1) % 2) == 0
    return jnp.where(even, -_lane_roll(x, -1), _lane_roll(x, 1))


def _split_heads(x, heads, dim_head):
    L = x.shape[0]
    return jnp.swapaxes(x.reshape(L, heads, dim_head), 0, 1)      # (H, L, Dh)


def _merge_heads(x):
    H, L, Dh = x.shape
    return jnp.swapaxes(x, 0, 1).reshape(L, H * Dh)               # (L, H*Dh)


def _mha(q, k, v, cq, sq, ck, sk, bias, heads, dim_head, rotate_value):
    """Batched-head rotary attention on packed (L, heads*dim_head) projections.

    cq/sq: (Lq, Dh), ck/sk: (Lk, Dh) - broadcast over the leading head axis.
    The 1/sqrt(dim_head) softmax scale is folded into the q projection weights.
    Returns (Lq, heads*dim_head) float32.
    """
    q3 = _split_heads(q, heads, dim_head)
    k3 = _split_heads(k, heads, dim_head)
    v3 = _split_heads(v, heads, dim_head)

    qr = (q3 * cq + _rotate_half(q3) * sq).astype(jnp.bfloat16)
    kr = (k3 * ck + _rotate_half(k3) * sk).astype(jnp.bfloat16)
    if rotate_value:
        v3 = v3 * ck + _rotate_half(v3) * sk

    s = jnp.einsum("hqd,hkd->hqk", qr, kr, preferred_element_type=jnp.float32)
    if bias is not None:
        s = s + bias                                   # (1, Lk) additive mask bias
    m = jnp.max(s, axis=-1, keepdims=True)
    e = jnp.exp(s - m)
    p = e * pl.reciprocal(jnp.sum(e, axis=-1, keepdims=True), approx=True)
    o3 = jnp.einsum("hqk,hkd->hqd", p.astype(jnp.bfloat16),
                    v3.astype(jnp.bfloat16), preferred_element_type=jnp.float32)
    if rotate_value:
        # un-rotate with -query freqs: cos(-f)=cos(f), sin(-f)=-sin(f)
        o3 = o3 * cq - _rotate_half(o3) * sq
    return _merge_heads(o3)


def _ffn_math(x, g, b, w1, b1, w2, b2, hidden):
    """LayerNorm -> Linear(D, 2*hidden) -> GEGLU -> Linear(hidden, D) + residual."""
    xn = _ln(x, g, b).astype(jnp.bfloat16)
    h = jnp.dot(xn, w1, preferred_element_type=jnp.float32) + b1
    # TODO(synk): torch F.gelu defaults to exact erf; tanh approximation kept
    # for Mosaic-friendly lowering (~1e-3 numerical difference).
    u = (h[:, :hidden] * jax.nn.gelu(h[:, hidden:], approximate=True)).astype(jnp.bfloat16)
    return x + jnp.dot(u, w2, preferred_element_type=jnp.float32) + b2


# ------------------------------ Pallas kernels ------------------------------

def _cross_block_kernel(*refs, heads, dim_head, rotate_value, has_mask):
    if has_mask:
        (xq_ref, xc_ref, cq_ref, sq_ref, ck_ref, sk_ref, mask_ref,
         gq_ref, bq_ref, gc_ref, bc_ref, wq_ref, wkv_ref, wo_ref, bo_ref,
         o_ref) = refs
    else:
        (xq_ref, xc_ref, cq_ref, sq_ref, ck_ref, sk_ref,
         gq_ref, bq_ref, gc_ref, bc_ref, wq_ref, wkv_ref, wo_ref, bo_ref,
         o_ref) = refs
        mask_ref = None
    inner = heads * dim_head

    xq = xq_ref[0]                                                  # (Lq, D) f32
    xqn = _ln(xq, gq_ref[0], bq_ref[0]).astype(jnp.bfloat16)
    xcn = _ln(xc_ref[0], gc_ref[0], bc_ref[0]).astype(jnp.bfloat16)

    q = jnp.dot(xqn, wq_ref[...], preferred_element_type=jnp.float32)   # scale in w_q
    kv = jnp.dot(xcn, wkv_ref[...], preferred_element_type=jnp.float32)
    k, v = kv[:, :inner], kv[:, inner:]

    bias = mask_ref[0] if has_mask else None                        # (1, Lk)
    o = _mha(q, k, v, cq_ref[0], sq_ref[0], ck_ref[0], sk_ref[0], bias,
             heads, dim_head, rotate_value)
    o_ref[0] = xq + jnp.dot(o.astype(jnp.bfloat16), wo_ref[...],
                            preferred_element_type=jnp.float32) + bo_ref[0]


def _process_layer_kernel(x_ref, cos_ref, sin_ref, ng_ref, nb_ref, wqkv_ref, wo_ref,
                          bo_ref, fg_ref, fb_ref, w1_ref, b1_ref, w2_ref, b2_ref,
                          o_ref, *, heads, dim_head, hidden, rotate_value):
    """One (self-attention + FFN) layer; grid = (batch, layer).

    The output block index is constant along the layer axis, so the latents
    stay resident in VMEM for the whole stack (one HBM round-trip per batch
    element instead of 2*depth kernel launches + writebacks).
    """
    inner = heads * dim_head

    @pl.when(pl.program_id(1) == 0)
    def _():
        o_ref[0] = x_ref[0]                 # latents enter VMEM once per batch elem

    x = o_ref[0]                            # resident across the layer grid axis
    c = cos_ref[0]
    s = sin_ref[0]

    # --- residual + RotarySelfAttention ---
    xn = _ln(x, ng_ref[0, 0], nb_ref[0, 0]).astype(jnp.bfloat16)
    qkv = jnp.dot(xn, wqkv_ref[0], preferred_element_type=jnp.float32)
    q, k, v = qkv[:, :inner], qkv[:, inner:2 * inner], qkv[:, 2 * inner:]
    attn = _mha(q, k, v, c, s, c, s, None, heads, dim_head, rotate_value)
    x = x + jnp.dot(attn.astype(jnp.bfloat16), wo_ref[0],
                    preferred_element_type=jnp.float32) + bo_ref[0, 0]

    # --- residual + FeedForward (LayerNorm -> GEGLU) ---
    x = _ffn_math(x, fg_ref[0, 0], fb_ref[0, 0], w1_ref[0], b1_ref[0, 0],
                  w2_ref[0], b2_ref[0, 0], hidden)
    o_ref[0] = x


def _ffn_kernel(x_ref, g_ref, b_ref, w1_ref, b1_ref, w2_ref, b2_ref, o_ref, *, hidden):
    o_ref[...] = _ffn_math(x_ref[...], g_ref[0], b_ref[0], w1_ref[...], b1_ref[0],
                           w2_ref[...], b2_ref[0], hidden)


def _linear_kernel(x_ref, w_ref, b_ref, o_ref):
    o_ref[...] = jnp.dot(x_ref[...].astype(jnp.bfloat16), w_ref[...],
                         preferred_element_type=jnp.float32) + b_ref[...]


# ------------------------------ host wrappers ------------------------------

def _row_tile(rows):
    # 512-row cap: measured ~85% of HBM roofline vs ~63% at 256 (v6e/v5e).
    return min(512, _round_up(rows, 8))


def linear(x, w, b):
    """Row-tiled y = x @ w + b.  x: (..., K) f32, w: (K, N) bf16, b: (1, N) f32."""
    lead = x.shape[:-1]
    K = x.shape[-1]
    N = w.shape[-1]
    x2 = x.reshape(-1, K)
    R = x2.shape[0]
    tile = _row_tile(R)
    Rp = _round_up(R, tile)
    if Rp != R:
        x2 = jnp.pad(x2, ((0, Rp - R), (0, 0)))
    out = pl.pallas_call(
        _linear_kernel,
        out_shape=jax.ShapeDtypeStruct((Rp, N), jnp.float32),
        grid=(Rp // tile,),
        in_specs=[pl.BlockSpec((tile, K), lambda i: (i, 0)),
                  _const_spec((K, N)), _const_spec((1, N))],
        out_specs=pl.BlockSpec((tile, N), lambda i: (i, 0)),
        compiler_params=pltpu.CompilerParams(
            dimension_semantics=("parallel",),
            vmem_limit_bytes=_vmem_limit(x2, w, b)),
    )(x2, w, b)
    return out[:R].reshape(*lead, N)


def ffn(x, p):
    """Fused (residual + FeedForward(LayerNorm, GEGLU)) block, row-tiled."""
    lead = x.shape[:-1]
    D = x.shape[-1]
    hidden = p["w2"].shape[0]
    x2 = x.reshape(-1, D)
    R = x2.shape[0]
    tile = _row_tile(R)
    Rp = _round_up(R, tile)
    if Rp != R:
        x2 = jnp.pad(x2, ((0, Rp - R), (0, 0)))
    # TODO(synk): for production dims (>=512) add an 'arbitrary' grid axis over
    # the hidden dim with a VMEM accumulator so w1/w2 residency fits v7x VMEM.
    args = (x2, p["g"], p["b"], p["w1"], p["b1"], p["w2"], p["b2"])
    out = pl.pallas_call(
        functools.partial(_ffn_kernel, hidden=hidden),
        out_shape=jax.ShapeDtypeStruct((Rp, D), jnp.float32),
        grid=(Rp // tile,),
        in_specs=[pl.BlockSpec((tile, D), lambda i: (i, 0)),
                  _const_spec((1, D)), _const_spec((1, D)),
                  _const_spec((D, 2 * hidden)), _const_spec((1, 2 * hidden)),
                  _const_spec((hidden, D)), _const_spec((1, D))],
        out_specs=pl.BlockSpec((tile, D), lambda i: (i, 0)),
        compiler_params=pltpu.CompilerParams(
            dimension_semantics=("parallel",),
            vmem_limit_bytes=_vmem_limit(*args)),
    )(*args)
    return out[:R].reshape(*lead, D)


def cross_attention_block(p, x_q, x_ctx, cos_q, sin_q, cos_k, sin_k, ctx_mask,
                          heads, dim_head, rotate_value):
    """Fused residual + RotaryCrossAttention block; grid over batch."""
    # TODO(synk): for production Lk (thousands of spike tokens) tile the KV axis
    # with an 'arbitrary' grid axis + online-softmax (m/l/acc) scratch so the
    # context blocks stay within v7x's 64 MiB VMEM.
    B, Lq, D = x_q.shape
    Lk = x_ctx.shape[1]
    inner = heads * dim_head
    dh = dim_head
    has_mask = ctx_mask is not None
    bmap3 = lambda b: (b, 0, 0)

    args = [x_q, x_ctx, cos_q, sin_q, cos_k, sin_k]
    specs = [pl.BlockSpec((1, Lq, D), bmap3),
             pl.BlockSpec((1, Lk, D), bmap3),
             pl.BlockSpec((1, Lq, dh), bmap3),
             pl.BlockSpec((1, Lq, dh), bmap3),
             pl.BlockSpec((1, Lk, dh), bmap3),
             pl.BlockSpec((1, Lk, dh), bmap3)]
    if has_mask:
        bias = jnp.where(ctx_mask, 0.0, -1e9).astype(jnp.float32).reshape(B, 1, Lk)
        args.append(bias)
        specs.append(pl.BlockSpec((1, 1, Lk), bmap3))
    args += [p["norm_q_g"], p["norm_q_b"], p["norm_c_g"], p["norm_c_b"],
             p["w_q"], p["w_kv"], p["w_o"], p["b_o"]]
    specs += [_const_spec((1, D))] * 4 + [
        _const_spec((D, inner)), _const_spec((D, 2 * inner)),
        _const_spec((inner, D)), _const_spec((1, D))]

    kern = functools.partial(_cross_block_kernel, heads=heads, dim_head=dim_head,
                             rotate_value=rotate_value, has_mask=has_mask)
    return pl.pallas_call(
        kern,
        out_shape=jax.ShapeDtypeStruct((B, Lq, D), jnp.float32),
        grid=(B,),
        in_specs=specs,
        out_specs=pl.BlockSpec((1, Lq, D), bmap3),
        compiler_params=pltpu.CompilerParams(
            dimension_semantics=("parallel",),
            vmem_limit_bytes=_vmem_limit(*args)),
    )(*args)


def process_stack(p, x, cos, sin, heads, dim_head):
    """Whole depth x (self-attn + FFN) stack in one pallas_call, grid=(B, depth)."""
    B, L, D = x.shape
    depth = p["w_qkv"].shape[0]
    inner = heads * dim_head
    hidden = p["w2"].shape[1]
    dh = cos.shape[-1]

    bmap = lambda b, l: (b, 0, 0)
    lmap = lambda b, l: (l, 0, 0)

    args = [x, cos, sin, p["norm_g"], p["norm_b"], p["w_qkv"], p["w_o"], p["b_o"],
            p["ffn_g"], p["ffn_b"], p["w1"], p["b1"], p["w2"], p["b2"]]
    in_specs = [
        pl.BlockSpec((1, L, D), bmap),
        pl.BlockSpec((1, L, dh), bmap),
        pl.BlockSpec((1, L, dh), bmap),
        pl.BlockSpec((1, 1, D), lmap), pl.BlockSpec((1, 1, D), lmap),
        pl.BlockSpec((1, D, 3 * inner), lmap),
        pl.BlockSpec((1, inner, D), lmap),
        pl.BlockSpec((1, 1, D), lmap),
        pl.BlockSpec((1, 1, D), lmap), pl.BlockSpec((1, 1, D), lmap),
        pl.BlockSpec((1, D, 2 * hidden), lmap),
        pl.BlockSpec((1, 1, 2 * hidden), lmap),
        pl.BlockSpec((1, hidden, D), lmap),
        pl.BlockSpec((1, 1, D), lmap),
    ]
    kern = functools.partial(_process_layer_kernel, heads=heads, dim_head=dim_head,
                             hidden=hidden, rotate_value=True)
    return pl.pallas_call(
        kern,
        out_shape=jax.ShapeDtypeStruct((B, L, D), jnp.float32),
        grid=(B, depth),
        in_specs=in_specs,
        out_specs=pl.BlockSpec((1, L, D), bmap),
        compiler_params=pltpu.CompilerParams(
            dimension_semantics=("parallel", "arbitrary"),
            vmem_limit_bytes=_vmem_limit(*args)),
    )(*args)


# ---------------------------- model forward (glue) ----------------------------

def rotary_cos_sin(timestamps, dim_head, t_min=1e-4, t_max=4.0):
    half = dim_head // 2
    inv_freq = np.zeros((half,), np.float32)
    idx = np.arange(0, half, 2, dtype=np.float32)
    inv_freq[: dim_head // 4] = (2.0 * np.pi / t_min) * (t_min / t_max) ** (idx / half)
    freqs = timestamps[..., None] * jnp.asarray(inv_freq)
    freqs = jnp.repeat(freqs, 2, axis=-1)          # (..., dim_head), pair-duplicated
    return jnp.cos(freqs), jnp.sin(freqs)


def poyo_plus_forward(params, batch, cfg):
    dim_head = cfg["dim_head"]

    # --- token embeddings (gathers; glue) ---
    inputs = (params["unit_emb"][batch["spike_unit_index"]]
              + params["spike_type_emb"][batch["spike_type"]])          # (B, Nin, D)
    latents = params["latent_emb"][batch["latent_index"]]               # (B, Nlat, D)
    output_queries = (params["task_emb"][batch["output_decoder_index"]]
                      + params["session_emb"][batch["session_index"]])  # (B, Nout, D)

    cos_in, sin_in = rotary_cos_sin(batch["spike_timestamps"], dim_head)
    cos_lat, sin_lat = rotary_cos_sin(batch["latent_timestamps"], dim_head)
    cos_out, sin_out = rotary_cos_sin(batch["output_timestamps"], dim_head)

    # --- encode: latents attend to spike tokens (rotate_value=True) ---
    latents = cross_attention_block(
        params["enc_atn"], latents, inputs, cos_lat, sin_lat, cos_in, sin_in,
        batch["input_mask"], cfg["cross_heads"], dim_head, rotate_value=True)
    latents = ffn(latents, params["enc_ffn"])

    # --- process: depth x (self-attn + FFN), single fused pallas_call ---
    latents = process_stack(params["proc"], latents, cos_lat, sin_lat,
                            cfg["self_heads"], dim_head)

    # --- decode: output queries attend to latents (rotate_value=False) ---
    output_queries = cross_attention_block(
        params["dec_atn"], output_queries, latents, cos_out, sin_out,
        cos_lat, sin_lat, None, cfg["cross_heads"], dim_head, rotate_value=False)
    output_latents = ffn(output_queries, params["dec_ffn"])

    # --- multitask readout: single concatenated, lane-padded-to-128 linear ---
    pred_cat = linear(output_latents, params["readout_w"], params["readout_b"])

    task_names = list(cfg["task_specs"].keys())
    outputs, losses_taskwise = {}, {}
    total_loss = jnp.float32(0.0)
    off = 0
    for name in task_names:
        spec = cfg["task_specs"][name]
        cdim = spec["dim"]
        pred = pred_cat[..., off:off + cdim]
        off += cdim
        outputs[name] = pred
        mask = (batch["output_decoder_index"] == spec["id"]).astype(jnp.float32)
        w = batch["output_weights"][name] * mask
        err = jnp.mean((pred - batch["output_values"][name]) ** 2, axis=-1)
        # TODO(synk): kirby dispatches per-spec loss_fn via a registry; a
        # weight-masked MSE is used here for all tasks.
        loss_t = jnp.sum(err * w) / jnp.maximum(jnp.sum(w), 1.0)
        losses_taskwise[name] = loss_t
        total_loss = total_loss + loss_t
    return outputs, total_loss, losses_taskwise


# ------------------------------- parameters -------------------------------

def init_params(key, cfg):
    dim, dh = cfg["dim"], cfg["dim_head"]
    ch, sh = cfg["cross_heads"], cfg["self_heads"]
    mult = 4
    kit = iter(jax.random.split(key, 128))

    def nrm(shape, scale=0.02):
        return jax.random.normal(next(kit), shape, jnp.float32) * scale

    def lin_w(i, o):
        s = 1.0 / np.sqrt(i)
        return jax.random.uniform(next(kit), (i, o), jnp.float32, -s, s)

    def lin_b(i, o):
        s = 1.0 / np.sqrt(i)
        return jax.random.uniform(next(kit), (o,), jnp.float32, -s, s)

    def cross_attn_p(q_dim, kv_dim, heads):
        inner = heads * dh
        return {"norm_q_g": jnp.ones((q_dim,), jnp.float32),
                "norm_q_b": jnp.zeros((q_dim,), jnp.float32),
                "norm_c_g": jnp.ones((kv_dim,), jnp.float32),
                "norm_c_b": jnp.zeros((kv_dim,), jnp.float32),
                "w_q": lin_w(q_dim, inner),
                "w_kv": lin_w(kv_dim, 2 * inner),
                "w_o": lin_w(inner, q_dim), "b_o": lin_b(inner, q_dim)}

    def self_attn_p(heads):
        inner = heads * dh
        return {"norm_g": jnp.ones((dim,), jnp.float32),
                "norm_b": jnp.zeros((dim,), jnp.float32),
                "w_qkv": lin_w(dim, 3 * inner),
                "w_o": lin_w(inner, dim), "b_o": lin_b(inner, dim)}

    def ffn_p():
        hidden = dim * mult
        return {"g": jnp.ones((dim,), jnp.float32),
                "b": jnp.zeros((dim,), jnp.float32),
                "w1": lin_w(dim, 2 * hidden), "b1": lin_b(dim, 2 * hidden),
                "w2": lin_w(hidden, dim), "b2": lin_b(hidden, dim)}

    return {
        "unit_emb": nrm((cfg["num_units"], dim)),
        "session_emb": nrm((cfg["num_sessions"], dim)),
        "spike_type_emb": nrm((4, dim)),
        "task_emb": nrm((cfg["num_task_ids"], dim)),
        "latent_emb": nrm((cfg["num_latents"], dim)),
        "enc_atn": cross_attn_p(dim, dim, ch),
        "enc_ffn": ffn_p(),
        "proc_layers": [{"attn": self_attn_p(sh), "ffn": ffn_p()}
                        for _ in range(cfg["depth"])],
        "dec_atn": cross_attn_p(dim, dim, ch),
        "dec_ffn": ffn_p(),
        "readout": {name: {"w": lin_w(dim, spec["dim"]),
                           "b": lin_b(dim, spec["dim"])}
                    for name, spec in cfg["task_specs"].items()},
    }


def prepare_params(params, cfg):
    """One-time host-side prep: bf16 weight casts, softmax-scale folding,
    2-D/3-D bias slabs, per-layer stacking for the fused process kernel,
    concatenated + lane-padded readout weights."""
    dh = cfg["dim_head"]
    scale = float(dh) ** -0.5
    bf16 = lambda w: w.astype(jnp.bfloat16)
    row = lambda v: v.reshape(1, -1)

    def cross(p):
        return {"norm_q_g": row(p["norm_q_g"]), "norm_q_b": row(p["norm_q_b"]),
                "norm_c_g": row(p["norm_c_g"]), "norm_c_b": row(p["norm_c_b"]),
                "w_q": bf16(p["w_q"] * scale),        # softmax scale folded in
                "w_kv": bf16(p["w_kv"]),
                "w_o": bf16(p["w_o"]), "b_o": row(p["b_o"])}

    def ffn_prep(p):
        return {"g": row(p["g"]), "b": row(p["b"]),
                "w1": bf16(p["w1"]), "b1": row(p["b1"]),
                "w2": bf16(p["w2"]), "b2": row(p["b2"])}

    layers = params["proc_layers"]
    inner_s = cfg["self_heads"] * dh

    def stack(fn):
        return jnp.stack([fn(l) for l in layers], axis=0)           # (depth, ...)

    def stack_rows(fn):
        return jnp.stack([fn(l).reshape(1, -1) for l in layers], axis=0)  # (depth,1,N)

    def fold_qkv(w):      # fold softmax scale into the q slab of w_qkv
        return jnp.concatenate([w[:, :inner_s] * scale, w[:, inner_s:]], axis=1)

    proc = {
        "norm_g": stack_rows(lambda l: l["attn"]["norm_g"]),
        "norm_b": stack_rows(lambda l: l["attn"]["norm_b"]),
        "w_qkv": bf16(stack(lambda l: fold_qkv(l["attn"]["w_qkv"]))),
        "w_o": bf16(stack(lambda l: l["attn"]["w_o"])),
        "b_o": stack_rows(lambda l: l["attn"]["b_o"]),
        "ffn_g": stack_rows(lambda l: l["ffn"]["g"]),
        "ffn_b": stack_rows(lambda l: l["ffn"]["b"]),
        "w1": bf16(stack(lambda l: l["ffn"]["w1"])),
        "b1": stack_rows(lambda l: l["ffn"]["b1"]),
        "w2": bf16(stack(lambda l: l["ffn"]["w2"])),
        "b2": stack_rows(lambda l: l["ffn"]["b2"]),
    }

    task_names = list(cfg["task_specs"].keys())
    w_cat = jnp.concatenate([params["readout"][n]["w"] for n in task_names], axis=1)
    b_cat = jnp.concatenate([params["readout"][n]["b"] for n in task_names], axis=0)
    total = w_cat.shape[1]
    pad = _round_up(max(total, 1), 128) - total       # lane-dense (unmasked) stores
    if pad:
        w_cat = jnp.pad(w_cat, ((0, 0), (0, pad)))
        b_cat = jnp.pad(b_cat, ((0, pad),))

    return {
        "unit_emb": params["unit_emb"], "session_emb": params["session_emb"],
        "spike_type_emb": params["spike_type_emb"], "task_emb": params["task_emb"],
        "latent_emb": params["latent_emb"],
        "enc_atn": cross(params["enc_atn"]), "enc_ffn": ffn_prep(params["enc_ffn"]),
        "proc": proc,
        "dec_atn": cross(params["dec_atn"]), "dec_ffn": ffn_prep(params["dec_ffn"]),
        "readout_w": bf16(w_cat), "readout_b": row(b_cat),
    }


# ----------------------------------- main -----------------------------------

if __name__ == "__main__":
    # NOTE: demo-only sizes; D / heads*dim_head below 128 lanes is acknowledged
    # (production dims should keep D and inner multiples of 128).
    cfg = {
        "dim": 32, "dim_head": 8, "num_latents": 8, "depth": 2,
        "cross_heads": 1, "self_heads": 2,
        "num_units": 20, "num_sessions": 3, "num_task_ids": 4,
        "task_specs": {"task_a": {"id": 0, "dim": 2},
                       "task_b": {"id": 1, "dim": 3}},
    }
    B, N_in, N_lat, N_out = 2, 16, cfg["num_latents"], 8

    key = jax.random.PRNGKey(0)
    kp, kd = jax.random.split(key)
    params = prepare_params(init_params(kp, cfg), cfg)

    ks = jax.random.split(kd, 8)
    batch = {
        "spike_unit_index": jax.random.randint(ks[0], (B, N_in), 0, cfg["num_units"]),
        "spike_timestamps": jax.random.uniform(ks[1], (B, N_in), jnp.float32, 0.0, 1.0),
        "spike_type": jax.random.randint(ks[2], (B, N_in), 0, 4),
        "input_mask": jnp.concatenate(
            [jnp.ones((B, N_in - 2), dtype=bool), jnp.zeros((B, 2), dtype=bool)], axis=1),
        "latent_index": jnp.tile(jnp.arange(N_lat)[None, :], (B, 1)),
        "latent_timestamps": jnp.tile(
            jnp.linspace(0.0, 1.0, N_lat)[None, :], (B, 1)).astype(jnp.float32),
        "session_index": jnp.tile(jnp.array([[1], [2]], dtype=jnp.int32), (1, N_out)),
        "output_timestamps": jax.random.uniform(ks[3], (B, N_out), jnp.float32, 0.0, 1.0),
        "output_decoder_index": jax.random.randint(ks[4], (B, N_out), 0, 2),
        "output_values": {
            "task_a": jax.random.normal(ks[5], (B, N_out, 2), jnp.float32),
            "task_b": jax.random.normal(ks[6], (B, N_out, 3), jnp.float32),
        },
        "output_weights": {
            "task_a": jnp.ones((B, N_out), jnp.float32),
            "task_b": jnp.ones((B, N_out), jnp.float32),
        },
    }

    outputs, loss, losses_taskwise = poyo_plus_forward(params, batch, cfg)
    jax.block_until_ready((outputs, loss, losses_taskwise))
    assert outputs["task_a"].shape == (B, N_out, 2)
    assert outputs["task_b"].shape == (B, N_out, 3)
    assert np.isfinite(np.asarray(loss))
    print("KERNEL_OK")
</pallas_src>

<mosaic_0001>
module attributes {stable_mosaic.version = 11 : i64} {
  func.func @_cross_block_kernel(%arg0: i32, %arg1: memref<1x8x32xf32, #tpu.memory_space<vmem>>, %arg2: memref<1x16x32xf32, #tpu.memory_space<vmem>>, %arg3: memref<1x8x8xf32, #tpu.memory_space<vmem>>, %arg4: memref<1x8x8xf32, #tpu.memory_space<vmem>>, %arg5: memref<1x16x8xf32, #tpu.memory_space<vmem>>, %arg6: memref<1x16x8xf32, #tpu.memory_space<vmem>>, %arg7: memref<1x1x16xf32, #tpu.memory_space<vmem>>, %arg8: memref<1x32xf32, #tpu.memory_space<vmem>>, %arg9: memref<1x32xf32, #tpu.memory_space<vmem>>, %arg10: memref<1x32xf32, #tpu.memory_space<vmem>>, %arg11: memref<1x32xf32, #tpu.memory_space<vmem>>, %arg12: memref<32x8xbf16, #tpu.memory_space<vmem>>, %arg13: memref<32x16xbf16, #tpu.memory_space<vmem>>, %arg14: memref<8x32xbf16, #tpu.memory_space<vmem>>, %arg15: memref<1x32xf32, #tpu.memory_space<vmem>>, %arg16: memref<1x8x32xf32, #tpu.memory_space<vmem>>) attributes {dimension_semantics = [#tpu.dimension_semantics<parallel>], iteration_bounds = array<i64: 2>, scalar_prefetch = 0 : i64, scratch_operands = 0 : i64, tpu.core_type = #tpu.core_type<tc>, window_params = [{transform_indices = @transform_0, window_bounds = array<i64: 1, 8, 32>}, {transform_indices = @transform_1, window_bounds = array<i64: 1, 16, 32>}, {transform_indices = @transform_2, window_bounds = array<i64: 1, 8, 8>}, {transform_indices = @transform_3, window_bounds = array<i64: 1, 8, 8>}, {transform_indices = @transform_4, window_bounds = array<i64: 1, 16, 8>}, {transform_indices = @transform_5, window_bounds = array<i64: 1, 16, 8>}, {transform_indices = @transform_6, window_bounds = array<i64: 1, 1, 16>}, {pipeline_mode = #tpu.pipeline_mode<synchronous>, transform_indices = @transform_7, window_bounds = array<i64: 1, 32>}, {pipeline_mode = #tpu.pipeline_mode<synchronous>, transform_indices = @transform_8, window_bounds = array<i64: 1, 32>}, {pipeline_mode = #tpu.pipeline_mode<synchronous>, transform_indices = @transform_9, window_bounds = array<i64: 1, 32>}, {pipeline_mode = #tpu.pipeline_mode<synchronous>, transform_indices = @transform_10, window_bounds = array<i64: 1, 32>}, {pipeline_mode = #tpu.pipeline_mode<synchronous>, transform_indices = @transform_11, window_bounds = array<i64: 32, 8>}, {pipeline_mode = #tpu.pipeline_mode<synchronous>, transform_indices = @transform_12, window_bounds = array<i64: 32, 16>}, {pipeline_mode = #tpu.pipeline_mode<synchronous>, transform_indices = @transform_13, window_bounds = array<i64: 8, 32>}, {pipeline_mode = #tpu.pipeline_mode<synchronous>, transform_indices = @transform_14, window_bounds = array<i64: 1, 32>}, {transform_indices = @transform_15, window_bounds = array<i64: 1, 8, 32>}]} {
    %c0 = arith.constant 0 : index
    %c0_0 = arith.constant 0 : index
    %c0_1 = arith.constant 0 : index
    %0 = vector.load %arg1[%c0, %c0_0, %c0_1] : memref<1x8x32xf32, #tpu.memory_space<vmem>>, vector<1x8x32xf32>
    %1 = vector.shape_cast %0 : vector<1x8x32xf32> to vector<8x32xf32>
    %c0_2 = arith.constant 0 : index
    %c0_3 = arith.constant 0 : index
    %2 = vector.load %arg8[%c0_2, %c0_3] : memref<1x32xf32, #tpu.memory_space<vmem>>, vector<1x32xf32>
    %3 = vector.shape_cast %2 : vector<1x32xf32> to vector<32xf32>
    %c0_4 = arith.constant 0 : index
    %c0_5 = arith.constant 0 : index
    %4 = vector.load %arg9[%c0_4, %c0_5] : memref<1x32xf32, #tpu.memory_space<vmem>>, vector<1x32xf32>
    %5 = vector.shape_cast %4 : vector<1x32xf32> to vector<32xf32>
    %cst = arith.constant dense<0.000000e+00> : vector<8xf32>
    %6 = vector.multi_reduction <add>, %1, %cst [1] : vector<8x32xf32> to vector<8xf32>
    %7 = vector.shape_cast %6 : vector<8xf32> to vector<8x1xf32>
    %cst_6 = arith.constant 3.200000e+01 : f32
    %8 = vector.broadcast %cst_6 : f32 to vector<8x1xf32>
    %9 = arith.divf %7, %8 : vector<8x1xf32>
    %10 = vector.broadcast %9 : vector<8x1xf32> to vector<8x32xf32>
    %11 = arith.subf %1, %10 : vector<8x32xf32>
    %12 = arith.mulf %11, %11 : vector<8x32xf32>
    %cst_7 = arith.constant dense<0.000000e+00> : vector<8xf32>
    %13 = vector.multi_reduction <add>, %12, %cst_7 [1] : vector<8x32xf32> to vector<8xf32>
    %14 = vector.shape_cast %13 : vector<8xf32> to vector<8x1xf32>
    %cst_8 = arith.constant 3.200000e+01 : f32
    %15 = vector.broadcast %cst_8 : f32 to vector<8x1xf32>
    %16 = arith.divf %14, %15 : vector<8x1xf32>
    %17 = vector.broadcast %9 : vector<8x1xf32> to vector<8x32xf32>
    %18 = arith.subf %1, %17 : vector<8x32xf32>
    %cst_9 = arith.constant 9.99999974E-6 : f32
    %19 = vector.broadcast %cst_9 : f32 to vector<8x1xf32>
    %20 = arith.addf %16, %19 : vector<8x1xf32>
    %21 = math.rsqrt %20 : vector<8x1xf32>
    %22 = vector.broadcast %21 : vector<8x1xf32> to vector<8x32xf32>
    %23 = arith.mulf %18, %22 : vector<8x32xf32>
    %24 = vector.shape_cast %3 : vector<32xf32> to vector<1x32xf32>
    %25 = vector.broadcast %24 : vector<1x32xf32> to vector<8x32xf32>
    %26 = arith.mulf %23, %25 : vector<8x32xf32>
    %27 = vector.shape_cast %5 : vector<32xf32> to vector<1x32xf32>
    %28 = vector.broadcast %27 : vector<1x32xf32> to vector<8x32xf32>
    %29 = arith.addf %26, %28 : vector<8x32xf32>
    %30 = arith.truncf %29 : vector<8x32xf32> to vector<8x32xbf16>
    %c0_10 = arith.constant 0 : index
    %c0_11 = arith.constant 0 : index
    %c0_12 = arith.constant 0 : index
    %31 = vector.load %arg2[%c0_10, %c0_11, %c0_12] : memref<1x16x32xf32, #tpu.memory_space<vmem>>, vector<1x16x32xf32>
    %32 = vector.shape_cast %31 : vector<1x16x32xf32> to vector<16x32xf32>
    %c0_13 = arith.constant 0 : index
    %c0_14 = arith.constant 0 : index
    %33 = vector.load %arg10[%c0_13, %c0_14] : memref<1x32xf32, #tpu.memory_space<vmem>>, vector<1x32xf32>
    %34 = vector.shape_cast %33 : vector<1x32xf32> to vector<32xf32>
    %c0_15 = arith.constant 0 : index
    %c0_16 = arith.constant 0 : index
    %35 = vector.load %arg11[%c0_15, %c0_16] : memref<1x32xf32, #tpu.memory_space<vmem>>, vector<1x32xf32>
    %36 = vector.shape_cast %35 : vector<1x32xf32> to vector<32xf32>
    %cst_17 = arith.constant dense<0.000000e+00> : vector<16xf32>
    %37 = vector.multi_reduction <add>, %32, %cst_17 [1] : vector<16x32xf32> to vector<16xf32>
    %38 = vector.shape_cast %37 : vector<16xf32> to vector<16x1xf32>
    %cst_18 = arith.constant 3.200000e+01 : f32
    %39 = vector.broadcast %cst_18 : f32 to vector<16x1xf32>
    %40 = arith.divf %38, %39 : vector<16x1xf32>
    %41 = vector.broadcast %40 : vector<16x1xf32> to vector<16x32xf32>
    %42 = arith.subf %32, %41 : vector<16x32xf32>
    %43 = arith.mulf %42, %42 : vector<16x32xf32>
    %cst_19 = arith.constant dense<0.000000e+00> : vector<16xf32>
    %44 = vector.multi_reduction <add>, %43, %cst_19 [1] : vector<16x32xf32> to vector<16xf32>
    %45 = vector.shape_cast %44 : vector<16xf32> to vector<16x1xf32>
    %cst_20 = arith.constant 3.200000e+01 : f32
    %46 = vector.broadcast %cst_20 : f32 to vector<16x1xf32>
    %47 = arith.divf %45, %46 : vector<16x1xf32>
    %48 = vector.broadcast %40 : vector<16x1xf32> to vector<16x32xf32>
    %49 = arith.subf %32, %48 : vector<16x32xf32>
    %cst_21 = arith.constant 9.99999974E-6 : f32
    %50 = vector.broadcast %cst_21 : f32 to vector<16x1xf32>
    %51 = arith.addf %47, %50 : vector<16x1xf32>
    %52 = math.rsqrt %51 : vector<16x1xf32>
    %53 = vector.broadcast %52 : vector<16x1xf32> to vector<16x32xf32>
    %54 = arith.mulf %49, %53 : vector<16x32xf32>
    %55 = vector.shape_cast %34 : vector<32xf32> to vector<1x32xf32>
    %56 = vector.broadcast %55 : vector<1x32xf32> to vector<16x32xf32>
    %57 = arith.mulf %54, %56 : vector<16x32xf32>
    %58 = vector.shape_cast %36 : vector<32xf32> to vector<1x32xf32>
    %59 = vector.broadcast %58 : vector<1x32xf32> to vector<16x32xf32>
    %60 = arith.addf %57, %59 : vector<16x32xf32>
    %61 = arith.truncf %60 : vector<16x32xf32> to vector<16x32xbf16>
    %c0_22 = arith.constant 0 : index
    %c0_23 = arith.constant 0 : index
    %62 = vector.load %arg12[%c0_22, %c0_23] : memref<32x8xbf16, #tpu.memory_space<vmem>>, vector<32x8xbf16>
    %cst_24 = arith.constant dense<0.000000e+00> : vector<8x8xf32>
    %63 = tpu.matmul %30, %62, %cst_24 {dimension_numbers = #tpu.dot_dimension_numbers<[1], [0], [0], [1], [0, 0, 1, 1], [], []>} : vector<8x32xbf16>, vector<32x8xbf16>, vector<8x8xf32> -> vector<8x8xf32>
    %c0_25 = arith.constant 0 : index
    %c0_26 = arith.constant 0 : index
    %64 = vector.load %arg13[%c0_25, %c0_26] : memref<32x16xbf16, #tpu.memory_space<vmem>>, vector<32x16xbf16>
    %cst_27 = arith.constant dense<0.000000e+00> : vector<16x16xf32>
    %65 = tpu.matmul %61, %64, %cst_27 {dimension_numbers = #tpu.dot_dimension_numbers<[1], [0], [0], [1], [0, 0, 1, 1], [], []>} : vector<16x32xbf16>, vector<32x16xbf16>, vector<16x16xf32> -> vector<16x16xf32>
    %66 = vector.extract_strided_slice %65 {offsets = [0, 0], sizes = [16, 8], strides = [1, 1]} : vector<16x16xf32> to vector<16x8xf32>
    %67 = vector.extract_strided_slice %65 {offsets = [0, 8], sizes = [16, 8], strides = [1, 1]} : vector<16x16xf32> to vector<16x8xf32>
    %c0_28 = arith.constant 0 : index
    %c0_29 = arith.constant 0 : index
    %c0_30 = arith.constant 0 : index
    %68 = vector.load %arg7[%c0_28, %c0_29, %c0_30] : memref<1x1x16xf32, #tpu.memory_space<vmem>>, vector<1x1x16xf32>
    %69 = vector.shape_cast %68 : vector<1x1x16xf32> to vector<1x16xf32>
    %c0_31 = arith.constant 0 : index
    %c0_32 = arith.constant 0 : index
    %c0_33 = arith.constant 0 : index
    %70 = vector.load %arg3[%c0_31, %c0_32, %c0_33] : memref<1x8x8xf32, #tpu.memory_space<vmem>>, vector<1x8x8xf32>
    %71 = vector.shape_cast %70 : vector<1x8x8xf32> to vector<8x8xf32>
    %c0_34 = arith.constant 0 : index
    %c0_35 = arith.constant 0 : index
    %c0_36 = arith.constant 0 : index
    %72 = vector.load %arg4[%c0_34, %c0_35, %c0_36] : memref<1x8x8xf32, #tpu.memory_space<vmem>>, vector<1x8x8xf32>
    %73 = vector.shape_cast %72 : vector<1x8x8xf32> to vector<8x8xf32>
    %c0_37 = arith.constant 0 : index
    %c0_38 = arith.constant 0 : index
    %c0_39 = arith.constant 0 : index
    %74 = vector.load %arg5[%c0_37, %c0_38, %c0_39] : memref<1x16x8xf32, #tpu.memory_space<vmem>>, vector<1x16x8xf32>
    %75 = vector.shape_cast %74 : vector<1x16x8xf32> to vector<16x8xf32>
    %c0_40 = arith.constant 0 : index
    %c0_41 = arith.constant 0 : index
    %c0_42 = arith.constant 0 : index
    %76 = vector.load %arg6[%c0_40, %c0_41, %c0_42] : memref<1x16x8xf32, #tpu.memory_space<vmem>>, vector<1x16x8xf32>
    %77 = vector.shape_cast %76 : vector<1x16x8xf32> to vector<16x8xf32>
    %78 = vector.shape_cast %63 : vector<8x8xf32> to vector<8x1x8xf32>
    %79 = tpu.transpose %78, [1, 0, 2] : vector<8x1x8xf32> -> vector<1x8x8xf32>
    %80 = vector.shape_cast %66 : vector<16x8xf32> to vector<16x1x8xf32>
    %81 = tpu.transpose %80, [1, 0, 2] : vector<16x1x8xf32> -> vector<1x16x8xf32>
    %82 = vector.shape_cast %67 : vector<16x8xf32> to vector<16x1x8xf32>
    %83 = tpu.transpose %82, [1, 0, 2] : vector<16x1x8xf32> -> vector<1x16x8xf32>
    %84 = vector.shape_cast %71 : vector<8x8xf32> to vector<1x8x8xf32>
    %85 = arith.mulf %79, %84 : vector<1x8x8xf32>
    %86 = tpu.iota {dimensions = array<i32: 2>} : vector<1x1x8xi32>
    %c2_i32 = arith.constant 2 : i32
    %c0_i32 = arith.constant 0 : i32
    %87 = arith.cmpi eq, %c2_i32, %c0_i32 : i32
    %c1_i32 = arith.constant 1 : i32
    %88 = arith.select %87, %c1_i32, %c2_i32 : i32
    %89 = vector.broadcast %88 : i32 to vector<1x1x8xi32>
    %90 = arith.remsi %86, %89 : vector<1x1x8xi32>
    %c0_i32_43 = arith.constant 0 : i32
    %91 = vector.broadcast %c0_i32_43 : i32 to vector<1x1x8xi32>
    %92 = arith.cmpi ne, %90, %91 : vector<1x1x8xi32>
    %c0_i32_44 = arith.constant 0 : i32
    %93 = vector.broadcast %c0_i32_44 : i32 to vector<1x1x8xi32>
    %94 = arith.cmpi slt, %90, %93 : vector<1x1x8xi32>
    %c0_i32_45 = arith.constant 0 : i32
    %95 = arith.cmpi slt, %88, %c0_i32_45 : i32
    %96 = vector.broadcast %95 : i1 to vector<1x1x8xi1>
    %97 = vector.broadcast %96 : vector<1x1x8xi1> to vector<1x1x8xi1>
    %98 = arith.xori %94, %97 : vector<1x1x8xi1>
    %99 = arith.andi %98, %92 : vector<1x1x8xi1>
    %100 = vector.broadcast %88 : i32 to vector<1x1x8xi32>
    %101 = arith.addi %90, %100 : vector<1x1x8xi32>
    %102 = arith.select %99, %101, %90 : vector<1x1x8xi1>, vector<1x1x8xi32>
    %c0_i32_46 = arith.constant 0 : i32
    %103 = vector.broadcast %c0_i32_46 : i32 to vector<1x1x8xi32>
    %104 = arith.cmpi eq, %102, %103 : vector<1x1x8xi32>
    %105 = vector.extract_strided_slice %79 {offsets = [0, 0, 1], sizes = [1, 8, 7], strides = [1, 1, 1]} : vector<1x8x8xf32> to vector<1x8x7xf32>
    %106 = vector.extract_strided_slice %79 {offsets = [0, 0, 0], sizes = [1, 8, 1], strides = [1, 1, 1]} : vector<1x8x8xf32> to vector<1x8x1xf32>
    %107 = tpu.concatenate %105, %106 in 2 : vector<1x8x7xf32>, vector<1x8x1xf32> -> vector<1x8x8xf32>
    %cst_47 = arith.constant 0.000000e+00 : f32
    %108 = vector.broadcast %cst_47 : f32 to vector<1x8x8xf32>
    %109 = arith.subf %108, %107 : vector<1x8x8xf32>
    %110 = vector.extract_strided_slice %79 {offsets = [0, 0, 7], sizes = [1, 8, 1], strides = [1, 1, 1]} : vector<1x8x8xf32> to vector<1x8x1xf32>
    %111 = vector.extract_strided_slice %79 {offsets = [0, 0, 0], sizes = [1, 8, 7], strides = [1, 1, 1]} : vector<1x8x8xf32> to vector<1x8x7xf32>
    %112 = tpu.concatenate %110, %111 in 2 : vector<1x8x1xf32>, vector<1x8x7xf32> -> vector<1x8x8xf32>
    %113 = vector.shape_cast %104 : vector<1x1x8xi1> to vector<1x1x8xi1>
    %114 = vector.broadcast %113 : vector<1x1x8xi1> to vector<1x8x8xi1>
    %115 = arith.select %114, %109, %112 : vector<1x8x8xi1>, vector<1x8x8xf32>
    %116 = vector.shape_cast %73 : vector<8x8xf32> to vector<1x8x8xf32>
    %117 = arith.mulf %115, %116 : vector<1x8x8xf32>
    %118 = arith.addf %85, %117 : vector<1x8x8xf32>
    %119 = arith.truncf %118 : vector<1x8x8xf32> to vector<1x8x8xbf16>
    %120 = vector.shape_cast %75 : vector<16x8xf32> to vector<1x16x8xf32>
    %121 = arith.mulf %81, %120 : vector<1x16x8xf32>
    %122 = tpu.iota {dimensions = array<i32: 2>} : vector<1x1x8xi32>
    %c2_i32_48 = arith.constant 2 : i32
    %c0_i32_49 = arith.constant 0 : i32
    %123 = arith.cmpi eq, %c2_i32_48, %c0_i32_49 : i32
    %c1_i32_50 = arith.constant 1 : i32
    %124 = arith.select %123, %c1_i32_50, %c2_i32_48 : i32
    %125 = vector.broadcast %124 : i32 to vector<1x1x8xi32>
    %126 = arith.remsi %122, %125 : vector<1x1x8xi32>
    %c0_i32_51 = arith.constant 0 : i32
    %127 = vector.broadcast %c0_i32_51 : i32 to vector<1x1x8xi32>
    %128 = arith.cmpi ne, %126, %127 : vector<1x1x8xi32>
    %c0_i32_52 = arith.constant 0 : i32
    %129 = vector.broadcast %c0_i32_52 : i32 to vector<1x1x8xi32>
    %130 = arith.cmpi slt, %126, %129 : vector<1x1x8xi32>
    %c0_i32_53 = arith.constant 0 : i32
    %131 = arith.cmpi slt, %124, %c0_i32_53 : i32
    %132 = vector.broadcast %131 : i1 to vector<1x1x8xi1>
    %133 = vector.broadcast %132 : vector<1x1x8xi1> to vector<1x1x8xi1>
    %134 = arith.xori %130, %133 : vector<1x1x8xi1>
    %135 = arith.andi %134, %128 : vector<1x1x8xi1>
    %136 = vector.broadcast %124 : i32 to vector<1x1x8xi32>
    %137 = arith.addi %126, %136 : vector<1x1x8xi32>
    %138 = arith.select %135, %137, %126 : vector<1x1x8xi1>, vector<1x1x8xi32>
    %c0_i32_54 = arith.constant 0 : i32
    %139 = vector.broadcast %c0_i32_54 : i32 to vector<1x1x8xi32>
    %140 = arith.cmpi eq, %138, %139 : vector<1x1x8xi32>
    %141 = vector.extract_strided_slice %81 {offsets = [0, 0, 1], sizes = [1, 16, 7], strides = [1, 1, 1]} : vector<1x16x8xf32> to vector<1x16x7xf32>
    %142 = vector.extract_strided_slice %81 {offsets = [0, 0, 0], sizes = [1, 16, 1], strides = [1, 1, 1]} : vector<1x16x8xf32> to vector<1x16x1xf32>
    %143 = tpu.concatenate %141, %142 in 2 : vector<1x16x7xf32>, vector<1x16x1xf32> -> vector<1x16x8xf32>
    %cst_55 = arith.constant 0.000000e+00 : f32
    %144 = vector.broadcast %cst_55 : f32 to vector<1x16x8xf32>
    %145 = arith.subf %144, %143 : vector<1x16x8xf32>
    %146 = vector.extract_strided_slice %81 {offsets = [0, 0, 7], sizes = [1, 16, 1], strides = [1, 1, 1]} : vector<1x16x8xf32> to vector<1x16x1xf32>
    %147 = vector.extract_strided_slice %81 {offsets = [0, 0, 0], sizes = [1, 16, 7], strides = [1, 1, 1]} : vector<1x16x8xf32> to vector<1x16x7xf32>
    %148 = tpu.concatenate %146, %147 in 2 : vector<1x16x1xf32>, vector<1x16x7xf32> -> vector<1x16x8xf32>
    %149 = vector.shape_cast %140 : vector<1x1x8xi1> to vector<1x1x8xi1>
    %150 = vector.broadcast %149 : vector<1x1x8xi1> to vector<1x16x8xi1>
    %151 = arith.select %150, %145, %148 : vector<1x16x8xi1>, vector<1x16x8xf32>
    %152 = vector.shape_cast %77 : vector<16x8xf32> to vector<1x16x8xf32>
    %153 = arith.mulf %151, %152 : vector<1x16x8xf32>
    %154 = arith.addf %121, %153 : vector<1x16x8xf32>
    %155 = arith.truncf %154 : vector<1x16x8xf32> to vector<1x16x8xbf16>
    %156 = vector.shape_cast %75 : vector<16x8xf32> to vector<1x16x8xf32>
    %157 = arith.mulf %83, %156 : vector<1x16x8xf32>
    %158 = tpu.iota {dimensions = array<i32: 2>} : vector<1x1x8xi32>
    %c2_i32_56 = arith.constant 2 : i32
    %c0_i32_57 = arith.constant 0 : i32
    %159 = arith.cmpi eq, %c2_i32_56, %c0_i32_57 : i32
    %c1_i32_58 = arith.constant 1 : i32
    %160 = arith.select %159, %c1_i32_58, %c2_i32_56 : i32
    %161 = vector.broadcast %160 : i32 to vector<1x1x8xi32>
    %162 = arith.remsi %158, %161 : vector<1x1x8xi32>
    %c0_i32_59 = arith.constant 0 : i32
    %163 = vector.broadcast %c0_i32_59 : i32 to vector<1x1x8xi32>
    %164 = arith.cmpi ne, %162, %163 : vector<1x1x8xi32>
    %c0_i32_60 = arith.constant 0 : i32
    %165 = vector.broadcast %c0_i32_60 : i32 to vector<1x1x8xi32>
    %166 = arith.cmpi slt, %162, %165 : vector<1x1x8xi32>
    %c0_i32_61 = arith.constant 0 : i32
    %167 = arith.cmpi slt, %160, %c0_i32_61 : i32
    %168 = vector.broadcast %167 : i1 to vector<1x1x8xi1>
    %169 = vector.broadcast %168 : vector<1x1x8xi1> to vector<1x1x8xi1>
    %170 = arith.xori %166, %169 : vector<1x1x8xi1>
    %171 = arith.andi %170, %164 : vector<1x1x8xi1>
    %172 = vector.broadcast %160 : i32 to vector<1x1x8xi32>
    %173 = arith.addi %162, %172 : vector<1x1x8xi32>
    %174 = arith.select %171, %173, %162 : vector<1x1x8xi1>, vector<1x1x8xi32>
    %c0_i32_62 = arith.constant 0 : i32
    %175 = vector.broadcast %c0_i32_62 : i32 to vector<1x1x8xi32>
    %176 = arith.cmpi eq, %174, %175 : vector<1x1x8xi32>
    %177 = vector.extract_strided_slice %83 {offsets = [0, 0, 1], sizes = [1, 16, 7], strides = [1, 1, 1]} : vector<1x16x8xf32> to vector<1x16x7xf32>
    %178 = vector.extract_strided_slice %83 {offsets = [0, 0, 0], sizes = [1, 16, 1], strides = [1, 1, 1]} : vector<1x16x8xf32> to vector<1x16x1xf32>
    %179 = tpu.concatenate %177, %178 in 2 : vector<1x16x7xf32>, vector<1x16x1xf32> -> vector<1x16x8xf32>
    %cst_63 = arith.constant 0.000000e+00 : f32
    %180 = vector.broadcast %cst_63 : f32 to vector<1x16x8xf32>
    %181 = arith.subf %180, %179 : vector<1x16x8xf32>
    %182 = vector.extract_strided_slice %83 {offsets = [0, 0, 7], sizes = [1, 16, 1], strides = [1, 1, 1]} : vector<1x16x8xf32> to vector<1x16x1xf32>
    %183 = vector.extract_strided_slice %83 {offsets = [0, 0, 0], sizes = [1, 16, 7], strides = [1, 1, 1]} : vector<1x16x8xf32> to vector<1x16x7xf32>
    %184 = tpu.concatenate %182, %183 in 2 : vector<1x16x1xf32>, vector<1x16x7xf32> -> vector<1x16x8xf32>
    %185 = vector.shape_cast %176 : vector<1x1x8xi1> to vector<1x1x8xi1>
    %186 = vector.broadcast %185 : vector<1x1x8xi1> to vector<1x16x8xi1>
    %187 = arith.select %186, %181, %184 : vector<1x16x8xi1>, vector<1x16x8xf32>
    %188 = vector.shape_cast %77 : vector<16x8xf32> to vector<1x16x8xf32>
    %189 = arith.mulf %187, %188 : vector<1x16x8xf32>
    %190 = arith.addf %157, %189 : vector<1x16x8xf32>
    "tpu.trace_start"() <{level = 10 : i32, message = "hqd,hkd->hqk"}> : () -> ()
    %cst_64 = arith.constant dense<0.000000e+00> : vector<1x8x16xf32>
    %191 = tpu.matmul %119, %155, %cst_64 {dimension_numbers = #tpu.dot_dimension_numbers<[2], [2], [1], [1], [0, 0, 0, 1, 1, 1], [0], [0]>} : vector<1x8x8xbf16>, vector<1x16x8xbf16>, vector<1x8x16xf32> -> vector<1x8x16xf32>
    "tpu.trace_stop"() : () -> ()
    %192 = vector.shape_cast %69 : vector<1x16xf32> to vector<1x1x16xf32>
    %193 = vector.broadcast %192 : vector<1x1x16xf32> to vector<1x8x16xf32>
    %194 = arith.addf %191, %193 : vector<1x8x16xf32>
    %cst_65 = arith.constant dense<0xFF800000> : vector<1x8xf32>
    %195 = vector.multi_reduction <maximumf>, %194, %cst_65 [2] : vector<1x8x16xf32> to vector<1x8xf32>
    %196 = vector.shape_cast %195 : vector<1x8xf32> to vector<1x8x1xf32>
    %197 = vector.broadcast %196 : vector<1x8x1xf32> to vector<1x8x16xf32>
    %198 = arith.subf %194, %197 : vector<1x8x16xf32>
    %199 = math.exp %198 : vector<1x8x16xf32>
    %cst_66 = arith.constant dense<0.000000e+00> : vector<1x8xf32>
    %200 = vector.multi_reduction <add>, %199, %cst_66 [2] : vector<1x8x16xf32> to vector<1x8xf32>
    %201 = vector.shape_cast %200 : vector<1x8xf32> to vector<1x8x1xf32>
    %202 = tpu.reciprocal %201 {approx = true} : vector<1x8x1xf32> -> vector<1x8x1xf32>
    %203 = vector.broadcast %202 : vector<1x8x1xf32> to vector<1x8x16xf32>
    %204 = arith.mulf %199, %203 : vector<1x8x16xf32>
    %205 = arith.truncf %204 : vector<1x8x16xf32> to vector<1x8x16xbf16>
    %206 = arith.truncf %190 : vector<1x16x8xf32> to vector<1x16x8xbf16>
    "tpu.trace_start"() <{level = 10 : i32, message = "hqk,hkd->hqd"}> : () -> ()
    %cst_67 = arith.constant dense<0.000000e+00> : vector<1x8x8xf32>
    %207 = tpu.matmul %205, %206, %cst_67 {dimension_numbers = #tpu.dot_dimension_numbers<[2], [1], [1], [2], [0, 0, 0, 1, 1, 2], [0], [0]>} : vector<1x8x16xbf16>, vector<1x16x8xbf16>, vector<1x8x8xf32> -> vector<1x8x8xf32>
    "tpu.trace_stop"() : () -> ()
    %208 = vector.shape_cast %71 : vector<8x8xf32> to vector<1x8x8xf32>
    %209 = arith.mulf %207, %208 : vector<1x8x8xf32>
    %210 = tpu.iota {dimensions = array<i32: 2>} : vector<1x1x8xi32>
    %c2_i32_68 = arith.constant 2 : i32
    %c0_i32_69 = arith.constant 0 : i32
    %211 = arith.cmpi eq, %c2_i32_68, %c0_i32_69 : i32
    %c1_i32_70 = arith.constant 1 : i32
    %212 = arith.select %211, %c1_i32_70, %c2_i32_68 : i32
    %213 = vector.broadcast %212 : i32 to vector<1x1x8xi32>
    %214 = arith.remsi %210, %213 : vector<1x1x8xi32>
    %c0_i32_71 = arith.constant 0 : i32
    %215 = vector.broadcast %c0_i32_71 : i32 to vector<1x1x8xi32>
    %216 = arith.cmpi ne, %214, %215 : vector<1x1x8xi32>
    %c0_i32_72 = arith.constant 0 : i32
    %217 = vector.broadcast %c0_i32_72 : i32 to vector<1x1x8xi32>
    %218 = arith.cmpi slt, %214, %217 : vector<1x1x8xi32>
    %c0_i32_73 = arith.constant 0 : i32
    %219 = arith.cmpi slt, %212, %c0_i32_73 : i32
    %220 = vector.broadcast %219 : i1 to vector<1x1x8xi1>
    %221 = vector.broadcast %220 : vector<1x1x8xi1> to vector<1x1x8xi1>
    %222 = arith.xori %218, %221 : vector<1x1x8xi1>
    %223 = arith.andi %222, %216 : vector<1x1x8xi1>
    %224 = vector.broadcast %212 : i32 to vector<1x1x8xi32>
    %225 = arith.addi %214, %224 : vector<1x1x8xi32>
    %226 = arith.select %223, %225, %214 : vector<1x1x8xi1>, vector<1x1x8xi32>
    %c0_i32_74 = arith.constant 0 : i32
    %227 = vector.broadcast %c0_i32_74 : i32 to vector<1x1x8xi32>
    %228 = arith.cmpi eq, %226, %227 : vector<1x1x8xi32>
    %229 = vector.extract_strided_slice %207 {offsets = [0, 0, 1], sizes = [1, 8, 7], strides = [1, 1, 1]} : vector<1x8x8xf32> to vector<1x8x7xf32>
    %230 = vector.extract_strided_slice %207 {offsets = [0, 0, 0], sizes = [1, 8, 1], strides = [1, 1, 1]} : vector<1x8x8xf32> to vector<1x8x1xf32>
    %231 = tpu.concatenate %229, %230 in 2 : vector<1x8x7xf32>, vector<1x8x1xf32> -> vector<1x8x8xf32>
    %cst_75 = arith.constant 0.000000e+00 : f32
    %232 = vector.broadcast %cst_75 : f32 to vector<1x8x8xf32>
    %233 = arith.subf %232, %231 : vector<1x8x8xf32>
    %234 = vector.extract_strided_slice %207 {offsets = [0, 0, 7], sizes = [1, 8, 1], strides = [1, 1, 1]} : vector<1x8x8xf32> to vector<1x8x1xf32>
    %235 = vector.extract_strided_slice %207 {offsets = [0, 0, 0], sizes = [1, 8, 7], strides = [1, 1, 1]} : vector<1x8x8xf32> to vector<1x8x7xf32>
    %236 = tpu.concatenate %234, %235 in 2 : vector<1x8x1xf32>, vector<1x8x7xf32> -> vector<1x8x8xf32>
    %237 = vector.shape_cast %228 : vector<1x1x8xi1> to vector<1x1x8xi1>
    %238 = vector.broadcast %237 : vector<1x1x8xi1> to vector<1x8x8xi1>
    %239 = arith.select %238, %233, %236 : vector<1x8x8xi1>, vector<1x8x8xf32>
    %240 = vector.shape_cast %73 : vector<8x8xf32> to vector<1x8x8xf32>
    %241 = arith.mulf %239, %240 : vector<1x8x8xf32>
    %242 = arith.subf %209, %241 : vector<1x8x8xf32>
    %243 = tpu.transpose %242, [1, 0, 2] : vector<1x8x8xf32> -> vector<8x1x8xf32>
    %244 = vector.shape_cast %243 : vector<8x1x8xf32> to vector<8x8xf32>
    %245 = arith.truncf %244 : vector<8x8xf32> to vector<8x8xbf16>
    %c0_76 = arith.constant 0 : index
    %c0_77 = arith.constant 0 : index
    %246 = vector.load %arg14[%c0_76, %c0_77] : memref<8x32xbf16, #tpu.memory_space<vmem>>, vector<8x32xbf16>
    %cst_78 = arith.constant dense<0.000000e+00> : vector<8x32xf32>
    %247 = tpu.matmul %245, %246, %cst_78 {dimension_numbers = #tpu.dot_dimension_numbers<[1], [0], [0], [1], [0, 0, 1, 1], [], []>} : vector<8x8xbf16>, vector<8x32xbf16>, vector<8x32xf32> -> vector<8x32xf32>
    %248 = arith.addf %1, %247 : vector<8x32xf32>
    %c0_79 = arith.constant 0 : index
    %c0_80 = arith.constant 0 : index
    %249 = vector.load %arg15[%c0_79, %c0_80] : memref<1x32xf32, #tpu.memory_space<vmem>>, vector<1x32xf32>
    %250 = vector.shape_cast %249 : vector<1x32xf32> to vector<32xf32>
    %251 = vector.shape_cast %250 : vector<32xf32> to vector<1x32xf32>
    %252 = vector.broadcast %251 : vector<1x32xf32> to vector<8x32xf32>
    %253 = arith.addf %248, %252 : vector<8x32xf32>
    %c0_81 = arith.constant 0 : index
    %c0_82 = arith.constant 0 : index
    %c0_83 = arith.constant 0 : index
    %254 = vector.load %arg16[%c0_81, %c0_82, %c0_83] : memref<1x8x32xf32, #tpu.memory_space<vmem>>, vector<1x8x32xf32>
    %255 = vector.shape_cast %254 : vector<1x8x32xf32> to vector<8x32xf32>
    %256 = vector.shape_cast %253 : vector<8x32xf32> to vector<1x8x32xf32>
    tpu.vector_store %arg16[%c0_81, %c0_82, %c0_83], %256 {strides = array<i32>} : memref<1x8x32xf32, #tpu.memory_space<vmem>>, vector<1x8x32xf32>,
    return
  }
  func.func @transform_0(%arg0: i32) -> (i32, i32, i32) {
    %c0_i32 = arith.constant 0 : i32
    %c0_i32_0 = arith.constant 0 : i32
    %c0_i32_1 = arith.constant 0 : i32
    return %arg0, %c0_i32, %c0_i32_0 : i32, i32, i32
  }
  func.func @transform_1(%arg0: i32) -> (i32, i32, i32) {
    %c0_i32 = arith.constant 0 : i32
    %c0_i32_0 = arith.constant 0 : i32
    %c0_i32_1 = arith.constant 0 : i32
    return %arg0, %c0_i32, %c0_i32_0 : i32, i32, i32
  }
  func.func @transform_2(%arg0: i32) -> (i32, i32, i32) {
    %c0_i32 = arith.constant 0 : i32
    %c0_i32_0 = arith.constant 0 : i32
    %c0_i32_1 = arith.constant 0 : i32
    return %arg0, %c0_i32, %c0_i32_0 : i32, i32, i32
  }
  func.func @transform_3(%arg0: i32) -> (i32, i32, i32) {
    %c0_i32 = arith.constant 0 : i32
    %c0_i32_0 = arith.constant 0 : i32
    %c0_i32_1 = arith.constant 0 : i32
    return %arg0, %c0_i32, %c0_i32_0 : i32, i32, i32
  }
  func.func @transform_4(%arg0: i32) -> (i32, i32, i32) {
    %c0_i32 = arith.constant 0 : i32
    %c0_i32_0 = arith.constant 0 : i32
    %c0_i32_1 = arith.constant 0 : i32
    return %arg0, %c0_i32, %c0_i32_0 : i32, i32, i32
  }
  func.func @transform_5(%arg0: i32) -> (i32, i32, i32) {
    %c0_i32 = arith.constant 0 : i32
    %c0_i32_0 = arith.constant 0 : i32
    %c0_i32_1 = arith.constant 0 : i32
    return %arg0, %c0_i32, %c0_i32_0 : i32, i32, i32
  }
  func.func @transform_6(%arg0: i32) -> (i32, i32, i32) {
    %c0_i32 = arith.constant 0 : i32
    %c0_i32_0 = arith.constant 0 : i32
    %c0_i32_1 = arith.constant 0 : i32
    return %arg0, %c0_i32, %c0_i32_0 : i32, i32, i32
  }
  func.func @transform_7(%arg0: i32) -> (i32, i32) {
    %c0_i32 = arith.constant 0 : i32
    %c0_i32_0 = arith.constant 0 : i32
    %c0_i32_1 = arith.constant 0 : i32
    return %c0_i32, %c0_i32_0 : i32, i32
  }
  func.func @transform_8(%arg0: i32) -> (i32, i32) {
    %c0_i32 = arith.constant 0 : i32
    %c0_i32_0 = arith.constant 0 : i32
    %c0_i32_1 = arith.constant 0 : i32
    return %c0_i32, %c0_i32_0 : i32, i32
  }
  func.func @transform_9(%arg0: i32) -> (i32, i32) {
    %c0_i32 = arith.constant 0 : i32
    %c0_i32_0 = arith.constant 0 : i32
    %c0_i32_1 = arith.constant 0 : i32
    return %c0_i32, %c0_i32_0 : i32, i32
  }
  func.func @transform_10(%arg0: i32) -> (i32, i32) {
    %c0_i32 = arith.constant 0 : i32
    %c0_i32_0 = arith.constant 0 : i32
    %c0_i32_1 = arith.constant 0 : i32
    return %c0_i32, %c0_i32_0 : i32, i32
  }
  func.func @transform_11(%arg0: i32) -> (i32, i32) {
    %c0_i32 = arith.constant 0 : i32
    %c0_i32_0 = arith.constant 0 : i32
    %c0_i32_1 = arith.constant 0 : i32
    return %c0_i32, %c0_i32_0 : i32, i32
  }
  func.func @transform_12(%arg0: i32) -> (i32, i32) {
    %c0_i32 = arith.constant 0 : i32
    %c0_i32_0 = arith.constant 0 : i32
    %c0_i32_1 = arith.constant 0 : i32
    return %c0_i32, %c0_i32_0 : i32, i32
  }
  func.func @transform_13(%arg0: i32) -> (i32, i32) {
    %c0_i32 = arith.constant 0 : i32
    %c0_i32_0 = arith.constant 0 : i32
    %c0_i32_1 = arith.constant 0 : i32
    return %c0_i32, %c0_i32_0 : i32, i32
  }
  func.func @transform_14(%arg0: i32) -> (i32, i32) {
    %c0_i32 = arith.constant 0 : i32
    %c0_i32_0 = arith.constant 0 : i32
    %c0_i32_1 = arith.constant 0 : i32
    return %c0_i32, %c0_i32_0 : i32, i32
  }
  func.func @transform_15(%arg0: i32) -> (i32, i32, i32) {
    %c0_i32 = arith.constant 0 : i32
    %c0_i32_0 = arith.constant 0 : i32
    %c0_i32_1 = arith.constant 0 : i32
    return %arg0, %c0_i32, %c0_i32_0 : i32, i32, i32
  }
}

</mosaic_0001>

<bundles_post_ra>
// kernel: tpu_custom_call.1
= control target key start
LH: loop header
LB: loop body
LE: loop exit
PB: predicated region body
PF: predicated region fallthrough
CT: control target
= control target key end

     0   :  { %s3702_s0 = inlined_call_operand.vmem [shape: f32[2,8,32], index: 0, kind: input, shape index: {}]   ;;  %s3703_s1 = inlined_call_operand.vmem [shape: f32[2,16,32], index: 1, kind: input, shape index: {}]   ;;  %s3704_s2 = inlined_call_operand.vmem [shape: f32[2,8,8], index: 2, kind: input, shape index: {}]   ;;  %s3705_s3 = inlined_call_operand.vmem [shape: f32[2,8,8], index: 3, kind: input, shape index: {}]   ;;  %s3706_s4 = inlined_call_operand.vmem [shape: f32[2,16,8], index: 4, kind: input, shape index: {}]   ;;  %s3707_s5 = inlined_call_operand.vmem [shape: f32[2,16,8], index: 5, kind: input, shape index: {}]   ;;  %s3708_s6 = inlined_call_operand.vmem [shape: f32[2,1,16], index: 6, kind: input, shape index: {}]   ;;  %s3709_s7 = inlined_call_operand.vmem [shape: f32[1,32], index: 7, kind: input, shape index: {}]   ;;  %s3710_s8 = inlined_call_operand.vmem [shape: f32[1,32], index: 8, kind: input, shape index: {}]   ;;  %s3711_s9 = inlined_call_operand.vmem [shape: f32[1,32], index: 9, kind: input, shape index: {}]   ;;  %s3712_s10 = inlined_call_operand.vmem [shape: f32[1,32], index: 10, kind: input, shape index: {}]   ;;  %s3713_s11 = inlined_call_operand.vmem [shape: bf16[32,8], index: 11, kind: input, shape index: {}]   ;;  %s3714_s12 = inlined_call_operand.vmem [shape: bf16[32,16], index: 12, kind: input, shape index: {}]   ;;  %s3715_s13 = inlined_call_operand.vmem [shape: bf16[8,32], index: 13, kind: input, shape index: {}]   ;;  %s3716_s14 = inlined_call_operand.vmem [shape: f32[1,32], index: 14, kind: input, shape index: {}]   ;;  %s3717_s15 = inlined_call_operand.hbm [shape: f32[2,8,32], index: 15, kind: output, shape index: {}]  }
   0x1   :  { %3736 = sst [smem:[#allocation14_spill]] %s3702_s0 }
   0x2   :  { %3737 = sst [smem:[#allocation15_spill]] %s3703_s1 }
   0x3   :  { %20 = vsyncpa [#allocation3], 0 }
   0x4   :  { %22 = vsyncpa [#allocation3 + $0x1], 0  ;;  %s2947_s18 = smov 0   ;;  %s2949_s19 = smov 0  }
   0x5   :  { %s2951_s20 = smov 0   ;;  %s2953_s21 = smov 0  }
   0x6 LB: > { %3738 = sst [smem:[#allocation5_spill]] %s2850_s20  ;;  %s2968_s22 = sadd.s32 4294967295, %s2854_s21   ;;  %s2854_s21 = sphi %s2953_s21, %s3767_s21   ;;  %s2850_s20 = sphi %s2951_s20, %s3769_s20   ;;  %s2846_s19 = sphi %s2949_s19, %s3771_s19   ;;  %s2842_s18 = sphi %s2947_s18, %s3770_s18  }
   0x7   : > { %s2637_s23 = sadd.s32 4294967294, %s2854_s21   ;;  %s2972_s24 = sadd.s32 1, %s2854_s21  }
   0x8   : > { %3739 = sst [smem:[#allocation6_spill]] %s2972_s24  ;;  %s385_s25 = sadd.s32 1, %s2850_s20 }
   0x9   : > { %s382_s26 = ssub.s32 %s2854_s21, %s2972_s24  ;;  %p395_p0 = scmp.ne.s32.totalorder %s2850_s20, %s2846_s19 }
   0xa   : > { %p383_p1 = scmp.eq.s32.totalorder %s382_s26, 0  ;;  %p396_p2 = scmp.eq.s32.totalorder %s2968_s22, 1 }
   0xb   : > { %p401_p3 = scmp.ne.s32.totalorder %s2846_s19, %s2842_s18  ;;  %p402_p4 = scmp.eq.s32.totalorder %s2637_s23, 1 }
   0xc   : > { %s2983_s27 = scalar_select %p383_p1, %s2850_s20, %s385_s25  }
   0xd   : > { %p2985_p5 = por %p396_p2, %p395_p0  ;;  %p2989_p6 = por %p402_p4, %p401_p3 }
   0xe   : > { %3740 = sst [smem:[#allocation7_spill]] %s2983_s27  ;;  %p2640_p7 = scmp.ge.s32.totalorder %s2854_s21, 1 }
   0xf   : > { %s3742_s29 = scalar_select %p2989_p6, 1, 0 }
  0x10   : > { %p495_p8 = scmp.lt.s32.totalorder %s2854_s21, 3 }
  0x11   : > { %3743 = sst [smem:[#allocation8_spill]] %s3742_s29 }
  0x12   : > { %p496_p9 = pnand %p2640_p7, %p495_p8 }
  0x14   : > { %499 = sbr.rel (%p496_p9) target bundleno = 1881 (0x759), region = 80 }
  0x1b   : > { %p568_p10 = scmp.lt.s32.totalorder %s2968_s22, 1  ;;  %vm602_vm0 = vcmask 261120   ;;  %s3744_s1 = sld [smem:[#allocation15_spill]]  ;;  %v2777_v21 = vld [vmem:[%s3713_s11] sm:$0xff]   ;;  %v3728_v23 = vmov 0.0   ;;  %v2779_v24 = vld [vmem:[%s3713_s11 + $0x8] sm:$0xff]   ;;  %v810_v55 = vlaneseq }
  0x1c   : > { %s3745_s0 = sld [smem:[#allocation14_spill]]  ;;  %v2778_v22 = vld [vmem:[%s3714_s12] sm:$0xff]   ;;  %2691 = vmatprep.subr.bf16.mxu0 %v3728_v23  ;;  %2699 = vmatprep.subr.bf16.mxu1 %v3728_v23  ;;  %v2780_v25 = vld [vmem:[%s3714_s12 + $0x8] sm:$0xff]   ;;  %vm2857_vm1 = vmmov 0   ;;  %v2858_v53 = vmov 1966171168  }
  0x1d   : > { %s2997_s30 = scalar_select %p568_p10, %s2968_s22, 1  ;;  %2692 = vmatpush3.bf16.msra.mxu0 %v2777_v21  ;;  %2700 = vmatpush3.bf16.msra.mxu1 %v2778_v22  ;;  %v2653_v37 = vld [vmem:[%s3711_s9] ss:$0 sm:$0xff]  ;;  %v808_v54 = vunpack.c.l.s4 %v2858_v53  ;;  %v3063_v57 = vshrl.u32 %v810_v55, 7  ;;  %vm1163_vm2 = vcmask 56320   ;;  %vm1172_vm3 = vcmask 7168  }
  0x1e   : > { %2693 = vmatprep.subr.bf16.mxu0 %v3728_v23  ;;  %2701 = vmatprep.subr.bf16.mxu1 %v3728_v23  ;;  %v2651_v41 = vld [vmem:[%s3709_s7] ss:$0 sm:$0xff]  ;;  %s3724_s29 = smov 121   ;;  %s3722_s20 = smov 1   ;;  %vm2102_vm5 = vcmask 64512   ;;  %vm2149_vm6 = vcmask 130048  }
  0x1f   : > { %s3000_s16 = sshll.u32 %s2997_s30, 4  ;;  %s3003_s17 = sshll.u32 %s2997_s30, 3  ;;  %2695 = vmatprep.mubr.msk.bf16.mxu0 %vm2857_vm1, %v3728_v23  ;;  %2703 = vmatprep.mubr.msk.bf16.mxu1 %vm2857_vm1, %v3728_v23  ;;  %v2654_v44 = vld [vmem:[%s3712_s10] ss:$0 sm:$0xff]  ;;  %v809_v56 = vunpack.c.0.s8 %v808_v54  ;;  %3746 = vst [vmem:[#allocation9_spill] sm:$0xff] %v3063_v57  ;;  %vm2441_vm7 = vcmask 1043456  }
  0x20   : > { %v2652_v45 = vld [vmem:[%s3710_s8] ss:$0 sm:$0xff]  ;;  %s2863_s27 = smov 120   ;;  %s584_s25 = scalar_lea.vmem %s3705_s3, %s3003_s17  ;;  %vm2417_vm8 = vcmask 1041409   ;;  %vm2420_vm9 = vcmask 1042434   ;;  %vm2423_vm10 = vcmask 1043459  }
  0x21   : > { %s576_s26 = scalar_lea.vmem %s3744_s1, %s3000_s16  ;;  %2694 = vmatpush3.bf16.msra.mxu0 %v2779_v24  ;;  %2702 = vmatpush3.bf16.msra.mxu1 %v2780_v25  ;;  %v3066_v58 = vsub.s32 %v809_v56, %v3063_v57  ;;  %s2860_s1 = smov 127   ;;  %vm2426_vm11 = vcmask 1044484   ;;  %vm2429_vm12 = vcmask 1045509   ;;  %vm2432_vm13 = vcmask 1046534  }
  0x22   : > { %v632_v0 = vld [vmem:[%s576_s26] sm:$0xff]  ;;  %s3013_s24 = scalar_lea.vmem %s3745_s0, %s3003_s17  ;;  %v633_v2 = vld [vmem:[%s576_s26 + $0x8] sm:$0xff]  ;;  %2707 = vmatprep.subr.bf16.mxu0 %v3728_v23  ;;  %2713 = vmatprep.subr.bf16.mxu1 %v3728_v23  ;;  %s3726_s0 = smov 7   ;;  %vm2435_vm14 = vcmask 1047559  }
  0x23   : > { %v636_v1 = vsel %vm602_vm0, %v632_v0, 0.0  ;;  %v599_v3 = vld [vmem:[%s3013_s24] sm:$0xff]  ;;  %v639_v5 = vsel %vm602_vm0, %v633_v2, 0.0  ;;  %s580_s26 = scalar_lea.vmem %s3704_s2, %s3003_s17 }
  0x24   : > { %637 = vadd.xlane.f32.xlu0 %v636_v1  ;;  %v603_v4 = vsel %vm602_vm0, %v599_v3, 0.0 }
  0x25   : > { %604 = vadd.xlane.f32.xlu1 %v603_v4 }
  0x28   : > { %640 = vadd.xlane.f32.xlu0 %v639_v5 }
  0xb1   : > { %v638_v6 = vpop.xlane.xlu0 %637 }
  0xb2   : > { %v642_v7 = vmul.f32 0.03125, %v638_v6  ;;  %v605_v8 = vpop.xlane.xlu1 %604 }
  0xb3   : > { %v607_v9 = vmul.f32 0.03125, %v605_v8 }
  0xb4   : > { %v644_v10 = vsub.f32 %v632_v0, %v642_v7 }
  0xb5   : > { %v641_v11 = vpop.xlane.xlu0 %640  ;;  %v608_v12 = vsub.f32 %v599_v3, %v607_v9 }
  0xb6   : > { %v643_v13 = vmul.f32 0.03125, %v641_v11  ;;  %v646_v14 = vmul.f32 %v644_v10, %v644_v10 }
  0xb7   : > { %v609_v15 = vmul.f32 %v608_v12, %v608_v12 }
  0xb8   : > { %v645_v16 = vsub.f32 %v633_v2, %v643_v13  ;;  %v648_v17 = vsel %vm602_vm0, %v646_v14, 0.0 }
  0xb9   : > { %649 = vadd.xlane.f32.xlu1 %v648_v17  ;;  %v610_v19 = vsel %vm602_vm0, %v609_v15, 0.0 }
  0xba   : > { %v647_v18 = vmul.f32 %v645_v16, %v645_v16 }
  0xbc   : > { %v651_v20 = vsel %vm602_vm0, %v647_v18, 0.0 }
  0xbd   : > { %652 = vadd.xlane.f32.xlu0 %v651_v20  ;;  %611 = vadd.xlane.f32.xlu1 %v610_v19 }
 0x146   : > { %v650_v26 = vpop.xlane.xlu1 %649 }
 0x147   : > { %v654_v27 = vmul.f32 0.03125, %v650_v26 }
 0x149   : > { %v656_v28 = vadd.f32 1e-05, %v654_v27 }
 0x14a   : > { %v653_v29 = vpop.xlane.xlu0 %652  ;;  %v612_v30 = vpop.xlane.xlu1 %611 }
 0x14b   : > { %2781 = vrsqrt.f32 %v656_v28  ;;  %v655_v31 = vmul.f32 0.03125, %v653_v29  ;;  %v613_v32 = vmul.f32 0.03125, %v612_v30 }
 0x14d   : > { %v657_v33 = vadd.f32 1e-05, %v655_v31  ;;  %v614_v34 = vadd.f32 1e-05, %v613_v32 }
 0x14f   : > { %2783 = vrsqrt.f32 %v657_v33 }
 0x150   : > { %2785 = vrsqrt.f32 %v614_v34 }
 0x155   : > { %v2782_v35 = vpop.eup %2781 }
 0x156   : > { %v660_v36 = vmul.f32 %v2782_v35, %v644_v10 }
 0x158   : > { %v668_v42 = vmul.f32 %v2653_v37, %v660_v36 }
 0x159   : > { %v2784_v38 = vpop.eup %2783 }
 0x15a   : > { %v2786_v39 = vpop.eup %2785  ;;  %v661_v40 = vmul.f32 %v2784_v38, %v645_v16  ;;  %v676_v48 = vadd.f32 %v2654_v44, %v668_v42 }
 0x15b   : > { %v616_v43 = vmul.f32 %v2786_v39, %v608_v12 }
 0x15c   : > { %v669_v46 = vmul.f32 %v2653_v37, %v661_v40 }
 0x15d   : > { %v623_v47 = vmul.f32 %v2651_v41, %v616_v43 }
 0x15e   : > { %v677_v49 = vadd.f32 %v2654_v44, %v669_v46 }
 0x15f   : > { %v630_v50 = vadd.f32 %v2652_v45, %v623_v47 }
 0x160   : > { %v678_v51 = vpack.c.bf16 %v677_v49, %v676_v48 }
 0x161   : > { %v631_v52 = vpack.c.bf16 %v630_v50, %v630_v50 }
 0x162   : > { %2704 = vmatmul.mubr.msk.bf16.vlgmr.msra.gmra.mrb[0].mxu1 %vm602_vm0, %v678_v51 }
 0x163   : > { %2696 = vmatmul.mubr.msk.bf16.vlgmr.msra.gmra.mrb[0].mxu0 %vm602_vm0, %v631_v52  ;;  %2715 = vmatprep.mubr.msk.bf16.mxu1 %vm2857_vm1, %v3728_v23 }
 0x164   : > { %2709 = vmatprep.mubr.msk.bf16.mxu0 %vm2857_vm1, %v3728_v23 }
 0x235   : > { %v791_v59 = vpop.f32.mrb[0].mxu1 }
 0x236   : > { %v732_v60 = vpop.f32.mrb[0].mxu0  ;;  %v865_v61 = vcombine.high %v791_v59, %v791_v59  ;;  %v872_v62 = vrot.slane %v791_v59, %v3066_v58  ;;  %v2705_v63 = vpop.f32.mrb[1].mxu1 }
 0x237   : > { %v806_v0 = vcombine.high %v732_v60, %v732_v60  ;;  %v2697_v1 = vpop.f32.mrb[1].mxu0  ;;  %v794_v2 = vpop.f32.mrb[2].mxu1  ;;  %v813_v11 = vrot.slane %v732_v60, %v3066_v58 }
 0x238   : > { %v879_v3 = vrot.slane %v865_v61, %v3066_v58  ;;  %v735_v4 = vpop.f32.mrb[2].mxu0  ;;  %v914_v5 = vcombine.high %v794_v2, %v794_v2  ;;  %v2706_v6 = vpop.f32.mrb[3].mxu1  ;;  %v880_v8 = vcombine.high %v872_v62, %v872_v62  ;;  %v921_v9 = vrot.slane %v794_v2, %v3066_v58 }
 0x239   : > { %v820_v7 = vrot.slane %v806_v0, %v3066_v58  ;;  %v2698_v10 = vpop.f32.mrb[3].mxu0  ;;  %v821_v18 = vcombine.high %v813_v11, %v813_v11  ;;  %v3081_v20 = vrot.slane %v813_v11, %v3066_v58  ;;  %v3084_v21 = vrot.slane %v872_v62, %v3066_v58 }
 0x23a   : > { %v881_v12 = vcombine.high %v879_v3, %v879_v3  ;;  %v928_v13 = vrot.slane %v914_v5, %v3066_v58  ;;  %v3075_v15 = vrot.slane %v880_v8, %v3066_v58  ;;  %v929_v16 = vcombine.high %v921_v9, %v921_v9 }
 0x23b   : > { %v822_v14 = vcombine.high %v820_v7, %v820_v7  ;;  %v3087_v22 = vrot.slane %v820_v7, %v3066_v58  ;;  %v3093_v25 = vrot.slane %v879_v3, %v3066_v58  ;;  %v3096_v26 = vrot.slane %v921_v9, %v3066_v58 }
 0x23c   : > { %v930_v17 = vcombine.high %v928_v13, %v928_v13  ;;  %v3078_v19 = vrot.slane %v881_v12, %v3066_v58  ;;  %v3099_v27 = vrot.slane %v928_v13, %v3066_v58  ;;  %v3102_v28 = vrot.slane %v929_v16, %v3066_v58 }
 0x23d   : > { %v3090_v24 = vrot.slane %v822_v14, %v3066_v58  ;;  %v1435_v30 = vcombine.low %v3084_v21, %v3075_v15  ;;  %v3110_v31 = vrot.slane %v821_v18, %v3066_v58  ;;  %v2663_v32 = vcombine.high %v3084_v21, %v3075_v15 }
 0x23e   : > { %v3105_v29 = vrot.slane %v930_v17, %v3066_v58  ;;  %v1437_v33 = vcombine.low %v3093_v25, %v3078_v19  ;;  %v2664_v34 = vcombine.high %v3093_v25, %v3078_v19  ;;  %v1484_v36 = vcombine.low %v3096_v26, %v3102_v28  ;;  %v3230_v17 = vld [vmem:[%s580_s26] sm:$0xff]  ;;  %s2673_s26 = sshll.u32 %s2968_s22, 7 }
 0x23f   : > { %v1445_v35 = vrot.slane %v1435_v30, %v3066_v58  ;;  %v2665_v37 = vcombine.high %v3096_v26, %v3102_v28  ;;  %v1452_v39 = vrot.slane %v2663_v32, %v3066_v58  ;;  %v1110_v43 = vcombine.low %v3087_v22, %v3090_v24  ;;  %3747 = vst [vmem:[#allocation10_spill] sm:$0xff] %v3230_v17 }
 0x240   : > { %v1486_v38 = vcombine.low %v3099_v27, %v3105_v29  ;;  %v1459_v40 = vrot.slane %v1437_v33, %v3066_v58  ;;  %v1466_v41 = vrot.slane %v2664_v34, %v3066_v58  ;;  %v2666_v42 = vcombine.high %v3099_v27, %v3105_v29 }
 0x241   : > { %v1494_v44 = vrot.slane %v1484_v36, %v3066_v58  ;;  %v1501_v45 = vrot.slane %v2665_v37, %v3066_v58  ;;  %v2662_v47 = vcombine.high %v3087_v22, %v3090_v24  ;;  %v1467_v48 = vcombine.low %v1445_v35, %v1452_v39 }
 0x242   : > { %v1508_v46 = vrot.slane %v1486_v38, %v3066_v58  ;;  %v1468_v49 = vcombine.low %v1459_v40, %v1466_v41  ;;  %v1515_v50 = vrot.slane %v2666_v42, %v3066_v58  ;;  %v1108_v51 = vcombine.low %v3081_v20, %v3110_v31 }
 0x243   : > { %v2661_v52 = vcombine.high %v3081_v20, %v3110_v31  ;;  %v1475_v53 = vrot.slane %v1467_v48, %v3066_v58  ;;  %v1516_v56 = vcombine.low %v1494_v44, %v1501_v45  ;;  %v1132_v62 = vrot.slane %v1110_v43, %v3066_v58 }
 0x244   : > { %v1482_v54 = vrot.slane %v1468_v49, %v3066_v58  ;;  %v1517_v59 = vcombine.low %v1508_v46, %v1515_v50  ;;  %v1139_v63 = vrot.slane %v2662_v47, %v3066_v58  ;;  %v1118_v1 = vrot.slane %v1108_v51, %v3066_v58 }
 0x245   : > { %v1524_v0 = vrot.slane %v1516_v56, %v3066_v58  ;;  %v1125_v2 = vrot.slane %v2661_v52, %v3066_v58  ;;  %v3164_v9 = vcombine.high %v3078_v19, %v3078_v19  ;;  %v3176_v10 = vcombine.high %v3084_v21, %v3084_v21 }
 0x246   : > { %v1483_v60 = vcombine.low %v1475_v53, %v1482_v54  ;;  %v1531_v61 = vrot.slane %v1517_v59, %v3066_v58  ;;  %v1141_v4 = vcombine.low %v1132_v62, %v1139_v63  ;;  %v3182_v11 = vcombine.high %v3075_v15, %v3075_v15 }
 0x247   : > { %v1140_v5 = vcombine.low %v1118_v1, %v1125_v2  ;;  %v3192_v12 = vcombine.high %v3093_v25, %v3093_v25  ;;  %v3202_v13 = vcombine.high %v3096_v26, %v3096_v26  ;;  %v3208_v14 = vcombine.high %v3102_v28, %v3102_v28 }
 0x248   : > { %1539 = vrot.lane.b32.xlu1 %v1483_v60, %s3726_s0  ;;  %1533 = vrot.lane.b32.xlu0 %v1483_v60, %s2860_s1  ;;  %v1532_v3 = vcombine.low %v1524_v0, %v1531_v61  ;;  %v1155_v6 = vrot.slane %v1141_v4, %v3066_v58  ;;  %v3218_v16 = vcombine.high %v3105_v29, %v3105_v29  ;;  %v1094_v43 = vand.u32 127, %v810_v55 }
 0x249   : > { %v1148_v7 = vrot.slane %v1140_v5, %v3066_v58  ;;  %v1028_v32 = vcombine.high %v3230_v17, %v3230_v17  ;;  %v1035_v35 = vrot.slane %v3230_v17, %v3066_v58 }
 0x24a   : > { %v1099_v56 = vand.u32 1, %v1094_v43 }
 0x24b   : > { %v1156_v8 = vcombine.low %v1148_v7, %v1155_v6  ;;  %v1042_v36 = vrot.slane %v1028_v32, %v3066_v58  ;;  %v1043_v40 = vcombine.high %v1035_v35, %v1035_v35  ;;  %v1051_v46 = vrot.slane %v1035_v35, %v3066_v58 }
 0x24c   : > { %1549 = vrot.lane.b32.xlu0 %v1483_v60, %s3724_s29  ;;  %1535 = vrot.lane.b32.xlu1 %v1532_v3, %s2860_s1  ;;  %vm3295_vm4 = vcmp.eq.s32.totalorder %v1099_v56, 0 }
 0x24d   : > { %v1044_v42 = vcombine.high %v1042_v36, %v1042_v36  ;;  %v3247_v51 = vrot.slane %v1042_v36, %v3066_v58  ;;  %v1065_v52 = vrot.slane %v1043_v40, %v3066_v58  ;;  %v1073_v62 = vcombine.high %v1051_v46, %v1051_v46 }
 0x24f   : > { %v3254_v54 = vrot.slane %v1044_v42, %v3066_v58  ;;  %v1075_v6 = vcombine.high %v1065_v52, %v1065_v52  ;;  %v3343_v56 = vmul.f32 %v3247_v51, %v3087_v22 }
 0x250   : > { %1555 = vrot.lane.b32.xlu0 %v1483_v60, %s3722_s20  ;;  %1541 = vrot.lane.b32.xlu1 %v1532_v3, %s3726_s0 }
 0x254   : > { %1551 = vrot.lane.b32.xlu1 %v1532_v3, %s3724_s29  ;;  %1157 = vrot.lane.b32.xlu0 %v1156_v8, %s2860_s1 }
 0x258   : > { %1557 = vrot.lane.b32.xlu1 %v1532_v3, %s3722_s20  ;;  %1166 = vrot.lane.b32.xlu0 %v1156_v8, %s3724_s29  ;;  %s3759_s29 = smov 121  }
 0x25c   : > { %1160 = vrot.lane.b32.xlu1 %v1156_v8, %s3726_s0  ;;  %993 = vrot.lane.b32.xlu0 %v3164_v9, %s2863_s27  ;;  %s589_s0 = scalar_lea.vmem %s3706_s4, %s3000_s16 }
 0x25d   : > { %v802_v18 = vld [vmem:[%s589_s0 + $0x8] sm:$0xff]  ;;  %v801_v30 = vld [vmem:[%s589_s0] sm:$0xff]  ;;  %s597_s0 = scalar_lea.vmem %s3708_s6, %s2997_s30  ;;  %s3758_s30 = smov 7  }
 0x25e   : > { %v1354_v33 = vcombine.high %v802_v18, %v802_v18  ;;  %v1305_v34 = vcombine.high %v801_v30, %v801_v30  ;;  %v1361_v37 = vrot.slane %v802_v18, %v3066_v58  ;;  %v1312_v41 = vrot.slane %v801_v30, %v3066_v58 }
 0x25f   : > { %v851_v18 = vcombine.high %v3081_v20, %v3081_v20 }
 0x260   : > { %1169 = vrot.lane.b32.xlu1 %v1156_v8, %s3722_s20  ;;  %v1368_v38 = vrot.slane %v1354_v33, %v3066_v58  ;;  %v1319_v39 = vrot.slane %v1305_v34, %v3066_v58  ;;  %v1369_v44 = vcombine.high %v1361_v37, %v1361_v37  ;;  %v1320_v53 = vcombine.high %v1312_v41, %v1312_v41  ;;  %s3270_s20 = scalar_lea.vmem %s3707_s5, %s3000_s16 }
 0x261   : > { %v3257_v59 = vrot.slane %v1361_v37, %v3066_v58  ;;  %v3280_v4 = vrot.slane %v1312_v41, %v3066_v58  ;;  %v853_v33 = vcombine.high %v3110_v31, %v3110_v31  ;;  %v3310_v37 = vld [vmem:[%s3270_s20] sm:$0xff] }
 0x262   : > { %v3243_v45 = vrot.slane %v1368_v38, %v3066_v58  ;;  %v1370_v49 = vcombine.high %v1368_v38, %v1368_v38  ;;  %v1321_v50 = vcombine.high %v1319_v39, %v1319_v39  ;;  %v3251_v55 = vrot.slane %v1319_v39, %v3066_v58 }
 0x263   : > { %v3260_v60 = vrot.slane %v1369_v44, %v3066_v58  ;;  %v3285_v7 = vrot.slane %v1320_v53, %v3066_v58  ;;  %v3303_v34 = vcombine.high %v3257_v59, %v3257_v59  ;;  %v3323_v43 = vcombine.high %v3280_v4, %v3280_v4 }
 0x264   : > { %979 = vrot.lane.b32.xlu1 %v3084_v21, %s2863_s27  ;;  %3748 = vst [vmem:[#allocation11_spill] sm:$0xff] %v3243_v45  ;;  %v3264_v61 = vcombine.high %v3243_v45, %v3243_v45  ;;  %v3273_v1 = vrot.slane %v1370_v49, %v3066_v58  ;;  %v3277_v3 = vrot.slane %v1321_v50, %v3066_v58 }
 0x265   : > { %v3293_v30 = vcombine.high %v3251_v55, %v3251_v55  ;;  %v3307_v35 = vcombine.high %v3260_v60, %v3260_v60  ;;  %v3334_v49 = vcombine.high %v3285_v7, %v3285_v7  ;;  %v3337_v50 = vmul.f32 %v1065_v52, %v3110_v31 }
 0x266   : > { %3749 = vst [vmem:[#allocation12_spill] sm:$0xff] %v3273_v1  ;;  %v3314_v40 = vcombine.high %v3273_v1, %v3273_v1  ;;  %v3319_v42 = vcombine.high %v3277_v3, %v3277_v3  ;;  %v3339_v53 = vmul.f32 %v1073_v62, %v851_v18  ;;  %v3358_v62 = vmul.f32 %v3303_v34, %v3202_v13 }
 0x267   : > { %v1425_v31 = vmul.f32 %v3293_v30, %v3192_v12 }
 0x268   : > { %981 = vrot.lane.b32.xlu1 %v3075_v15, %s2863_s27  ;;  %3752 = vst [vmem:[#allocation13_spill] sm:$0xff] %v3314_v40 }
 0x26c   : > { %983 = vrot.lane.b32.xlu1 %v3176_v10, %s2863_s27 }
 0x270   : > { %985 = vrot.lane.b32.xlu1 %v3182_v11, %s2863_s27 }
 0x274   : > { %987 = vrot.lane.b32.xlu1 %v3093_v25, %s2863_s27 }
 0x278   : > { %989 = vrot.lane.b32.xlu1 %v3078_v19, %s2863_s27 }
 0x27c   : > { %991 = vrot.lane.b32.xlu1 %v3192_v12, %s2863_s27  ;;  %v1423_v12 = vmul.f32 %v3251_v55, %v3093_v25  ;;  %v1432_v25 = vmul.f32 %v3273_v1, %v3105_v29 }
 0x280   : > { %995 = vrot.lane.b32.xlu1 %v3096_v26, %s2863_s27 }
 0x284   : > { %997 = vrot.lane.b32.xlu1 %v3102_v28, %s2863_s27 }
 0x288   : > { %999 = vrot.lane.b32.xlu1 %v3202_v13, %s2863_s27  ;;  %v3374_v13 = vmul.f32 %v3257_v59, %v3096_v26 }
 0x28c   : > { %1001 = vrot.lane.b32.xlu1 %v3208_v14, %s2863_s27 }
 0x290   : > { %1003 = vrot.lane.b32.xlu1 %v3099_v27, %s2863_s27 }
 0x294   : > { %1005 = vrot.lane.b32.xlu1 %v3105_v29, %s2863_s27  ;;  %v1426_v29 = vmul.f32 %v3319_v42, %v3164_v9 }
 0x298   : > { %1009 = vrot.lane.b32.xlu1 %v3218_v16, %s2863_s27 }
 0x2ba   : > { %v1534_v47 = vpop.permute.xlu0 %1533  ;;  %v1540_v48 = vpop.permute.xlu1 %1539 }
 0x2bb   : > { %v1545_v2 = vsel %vm1163_vm2, %v1534_v47, %v1540_v48  ;;  %v3328_v47 = vmul.f32 %v1051_v46, %v3081_v20  ;;  %v3348_v46 = vmul.f32 %v1075_v6, %v853_v33  ;;  %v3364_v6 = vmul.f32 %v3307_v35, %v3208_v14 }
 0x2bc   : > { %v1547_v36 = vsub.f32 0.0, %v1545_v2  ;;  %v3352_v2 = vcombine.high %v3099_v27, %v3099_v27  ;;  %v3368_v33 = vmul.f32 %v3314_v40, %v3218_v16  ;;  %v1428_v14 = vmul.f32 %v3260_v60, %v3102_v28 }
 0x2bd   : > { %v3385_v16 = vmul.f32 %v3243_v45, %v3099_v27  ;;  %v1424_v27 = vmul.f32 %v3277_v3, %v3078_v19  ;;  %v1420_v20 = vmul.f32 %v3285_v7, %v3075_v15 }
 0x2be   : > { %v1550_v63 = vpop.permute.xlu0 %1549  ;;  %v1536_v0 = vpop.permute.xlu1 %1535 }
 0x2c2   : > { %v1556_v38 = vpop.permute.xlu0 %1555  ;;  %v1542_v39 = vpop.permute.xlu1 %1541 }
 0x2c3   : > { %v1561_v41 = vsel %vm1172_vm3, %v1550_v63, %v1556_v38  ;;  %v1546_v38 = vsel %vm1163_vm2, %v1536_v0, %v1542_v39 }
 0x2c4   : > { %v1563_v48 = vsel %vm3295_vm4, %v1547_v36, %v1561_v41  ;;  %v1548_v39 = vsub.f32 0.0, %v1546_v38 }
 0x2c5   : > { %v1565_v63 = vmul.f32 %v1563_v48, %v3310_v37 }
 0x2c6   : > { %v1552_v52 = vpop.permute.xlu1 %1551 }
 0x2c7   : > { %v1569_v18 = vcombine.high %v1565_v63, %v1565_v63  ;;  %v1576_v36 = vrot.slane %v1565_v63, %v3066_v58  ;;  %v3381_v63 = vld [vmem:[%s3270_s20 + $0x8] sm:$0xff]  ;;  %s3760_s20 = smov 1  }
 0x2c9   : > { %v1583_v41 = vrot.slane %v1569_v18, %v3066_v58  ;;  %v1584_v48 = vcombine.high %v1576_v36, %v1576_v36  ;;  %v1592_v0 = vrot.slane %v1576_v36, %v3066_v58  ;;  %v1419_v18 = vmul.f32 %v3280_v4, %v3084_v21  ;;  %v1158_v21 = vpop.permute.xlu0 %1157 }
 0x2ca   : > { %v1558_v26 = vpop.permute.xlu1 %1557 }
 0x2cb   : > { %v1585_v23 = vcombine.high %v1583_v41, %v1583_v41  ;;  %v1599_v36 = vrot.slane %v1583_v41, %v3066_v58  ;;  %v1606_v8 = vrot.slane %v1584_v48, %v3066_v58  ;;  %v1562_v28 = vsel %vm1172_vm3, %v1552_v52, %v1558_v26 }
 0x2cc   : > { %v1564_v38 = vsel %vm3295_vm4, %v1548_v39, %v1562_v28  ;;  %v1683_v48 = vadd.f32 %v1592_v0, %v1419_v18  ;;  %v1421_v52 = vmul.f32 %v3323_v43, %v3176_v10  ;;  %v1614_v19 = vcombine.high %v1592_v0, %v1592_v0 }
 0x2cd   : > { %v1566_v5 = vmul.f32 %v1564_v38, %v3381_v63  ;;  %v1613_v41 = vrot.slane %v1585_v23, %v3066_v58  ;;  %v1615_v26 = vcombine.high %v1599_v36, %v1599_v36  ;;  %v1684_v28 = vadd.f32 %v1606_v8, %v1420_v20 }
 0x2ce   : > { %v1161_v39 = vpop.permute.xlu1 %1160  ;;  %v1616_v44 = vcombine.high %v1606_v8, %v1606_v8  ;;  %v1687_v40 = vadd.f32 %v1599_v36, %v1423_v12  ;;  %v1422_v23 = vmul.f32 %v3334_v49, %v3182_v11  ;;  %v1685_v8 = vadd.f32 %v1614_v19, %v1421_v52 }
 0x2cf   : > { %v1618_v57 = vcombine.high %v1566_v5, %v1566_v5  ;;  %v1625_v9 = vrot.slane %v1566_v5, %v3066_v58  ;;  %v1617_v17 = vcombine.high %v1613_v41, %v1613_v41  ;;  %v1688_v15 = vadd.f32 %v1613_v41, %v1424_v27  ;;  %v1167_v27 = vpop.permute.xlu0 %1166 }
 0x2d0   : > { %v1164_v38 = vsel %vm1163_vm2, %v1158_v21, %v1161_v39  ;;  %v1715_v1 = vcombine.low %v1683_v48, %v1684_v28  ;;  %v1689_v0 = vadd.f32 %v1615_v26, %v1425_v31  ;;  %v1686_v12 = vadd.f32 %v1616_v44, %v1422_v23 }
 0x2d1   : > { %v1632_v10 = vrot.slane %v1618_v57, %v3066_v58  ;;  %v1633_v18 = vcombine.high %v1625_v9, %v1625_v9  ;;  %v1641_v20 = vrot.slane %v1625_v9, %v3066_v58  ;;  %v1690_v45 = vadd.f32 %v1617_v17, %v1426_v29 }
 0x2d2   : > { %v1170_v5 = vpop.permute.xlu1 %1169  ;;  %v1717_v36 = vcombine.low %v1687_v40, %v1688_v15  ;;  %v1165_v39 = vsub.f32 0.0, %v1164_v38  ;;  %v1716_v31 = vcombine.low %v1685_v8, %v1686_v12  ;;  %v1433_v29 = vmul.f32 %v3264_v61, %v3352_v2  ;;  %v3422_v40 = vld [vmem:[%s584_s25] sm:$0xff] }
 0x2d3   : > { %v1634_v21 = vcombine.high %v1632_v10, %v1632_v10  ;;  %v1648_v41 = vrot.slane %v1632_v10, %v3066_v58  ;;  %v1655_v11 = vrot.slane %v1633_v18, %v3066_v58  ;;  %v1663_v57 = vcombine.high %v1641_v20, %v1641_v20 }
 0x2d4   : > { %v1718_v48 = vcombine.low %v1689_v0, %v1690_v45  ;;  %v1173_v17 = vsel %vm1172_vm3, %v1167_v27, %v1170_v5  ;;  %v1725_v45 = vrot.slane %v1715_v1, %v3066_v58  ;;  %v1691_v18 = vadd.f32 %v1641_v20, %v3374_v13 }
 0x2d5   : > { %v1662_v26 = vrot.slane %v1634_v21, %v3066_v58  ;;  %v1664_v52 = vcombine.high %v1648_v41, %v1648_v41  ;;  %v1665_v44 = vcombine.high %v1655_v11, %v1655_v11  ;;  %v1692_v28 = vadd.f32 %v1655_v11, %v1428_v14 }
 0x2d6   : > { %v1693_v19 = vadd.f32 %v1663_v57, %v3358_v62  ;;  %v1176_v9 = vsel %vm3295_vm4, %v1165_v39, %v1173_v17  ;;  %v1746_v10 = vrot.slane %v1718_v48, %v3066_v58  ;;  %v1695_v0 = vadd.f32 %v1648_v41, %v3385_v16 }
 0x2d7   : > { %v1666_v15 = vcombine.high %v1662_v26, %v1662_v26  ;;  %v1694_v38 = vadd.f32 %v1665_v44, %v3364_v6  ;;  %v1696_v23 = vadd.f32 %v1662_v26, %v1432_v25  ;;  %v1177_v5 = vmul.f32 %v1176_v9, %v3422_v40 }
 0x2d8   : > { %v1732_v14 = vrot.slane %v1716_v31, %v3066_v58  ;;  %v1697_v62 = vadd.f32 %v1664_v52, %v1433_v29  ;;  %v1739_v1 = vrot.slane %v1717_v36, %v3066_v58  ;;  %v1090_v6 = vmul.f32 %v3254_v54, %v3090_v24 }
 0x2d9   : > { %v1698_v8 = vadd.f32 %v1666_v15, %v3368_v33  ;;  %v1765_v12 = vcombine.low %v1693_v19, %v1694_v38  ;;  %v1179_v25 = vcombine.high %v1177_v5, %v1177_v5  ;;  %v1186_v27 = vrot.slane %v1177_v5, %v3066_v58 }
 0x2da   : > { %v1747_v21 = vcombine.low %v1725_v45, %v1732_v14  ;;  %v1764_v13 = vcombine.low %v1691_v18, %v1692_v28  ;;  %v1766_v20 = vcombine.low %v1695_v0, %v1696_v23  ;;  %v1748_v16 = vcombine.low %v1739_v1, %v1746_v10 }
 0x2db   : > { %v1767_v41 = vcombine.low %v1697_v62, %v1698_v8  ;;  %v3753_v11 = vcombine.high %v3087_v22, %v3087_v22  ;;  %v3754_v33 = vcombine.high %v3247_v51, %v3247_v51  ;;  %v1193_v36 = vrot.slane %v1179_v25, %v3066_v58 }
 0x2dc   : > { %v1194_v48 = vcombine.high %v1186_v27, %v1186_v27  ;;  %v1202_v39 = vrot.slane %v1186_v27, %v3066_v58  ;;  %v3755_v17 = vcombine.high %v3090_v24, %v3090_v24  ;;  %v3756_v31 = vcombine.high %v3254_v54, %v3254_v54 }
 0x2dd   : > { %v1091_v57 = vmul.f32 %v3754_v33, %v3753_v11  ;;  %v1755_v26 = vrot.slane %v1747_v21, %v3066_v58  ;;  %v1762_v22 = vrot.slane %v1748_v16, %v3066_v58  ;;  %v1781_v52 = vrot.slane %v1765_v12, %v3066_v58 }
 0x2de   : > { %v1092_v29 = vmul.f32 %v3756_v31, %v3755_v17  ;;  %v1195_v51 = vcombine.high %v1193_v36, %v1193_v36  ;;  %v1209_v44 = vrot.slane %v1193_v36, %v3066_v58  ;;  %v1216_v28 = vrot.slane %v1194_v48, %v3066_v58 }
 0x2df   : > { %v1224_v19 = vcombine.high %v1202_v39, %v1202_v39  ;;  %v1763_v9 = vcombine.low %v1755_v26, %v1762_v22  ;;  %v1774_v45 = vrot.slane %v1764_v13, %v3066_v58  ;;  %v1788_v24 = vrot.slane %v1766_v20, %v3066_v58  ;;  %v3480_v26 = vpop.permute.xlu1 %979 }
 0x2e0   : > { %v1795_v54 = vrot.slane %v1767_v41, %v3066_v58  ;;  %v1223_v15 = vrot.slane %v1195_v51, %v3066_v58  ;;  %v1225_v38 = vcombine.high %v1209_v44, %v1209_v44  ;;  %v1226_v23 = vcombine.high %v1216_v28, %v1216_v28 }
 0x2e1   : > { %v1237_v10 = vadd.f32 %v1216_v28, %v3337_v50  ;;  %v1236_v18 = vadd.f32 %v1202_v39, %v3328_v47  ;;  %v1238_v0 = vadd.f32 %v1224_v19, %v3339_v53  ;;  %v1796_v5 = vcombine.low %v1774_v45, %v1781_v52  ;;  %v2667_v28 = vld [vmem:[%s597_s0] ss:$0 sm:$0xff] }
 0x2e2   : > { %v1797_v14 = vcombine.low %v1788_v24, %v1795_v54  ;;  %v1227_v62 = vcombine.high %v1223_v15, %v1223_v15  ;;  %v1239_v8 = vadd.f32 %v1226_v23, %v3348_v46  ;;  %v1240_v12 = vadd.f32 %v1209_v44, %v3343_v56 }
 0x2e3   : > { %v1241_v1 = vadd.f32 %v1223_v15, %v1090_v6  ;;  %v1242_v25 = vadd.f32 %v1225_v38, %v1091_v57  ;;  %v1252_v27 = vcombine.low %v1236_v18, %v1237_v10  ;;  %v1804_v21 = vrot.slane %v1796_v5, %v3066_v58  ;;  %v3482_v22 = vpop.permute.xlu1 %981  ;;  %v3499_v10 = vpop.permute.xlu0 %993 }
 0x2e4   : > { %v1243_v13 = vadd.f32 %v1227_v62, %v1092_v29  ;;  %v1253_v20 = vcombine.low %v1238_v0, %v1239_v8  ;;  %v1811_v50 = vrot.slane %v1797_v14, %v3066_v58  ;;  %v3757_v17 = vmov 0.0  }
 0x2e5   : > { %v1254_v16 = vcombine.low %v1240_v12, %v1241_v1  ;;  %v1262_v53 = vrot.slane %v1252_v27, %v3066_v58  ;;  %v1832_v14 = vcombine.low %v3480_v26, %v3482_v22 }
 0x2e6   : > { %v1255_v47 = vcombine.low %v1242_v25, %v1243_v13  ;;  %v1269_v41 = vrot.slane %v1253_v20, %v3066_v58  ;;  %v1812_v11 = vcombine.low %v1804_v21, %v1811_v50 }
 0x2e7   : > { %v1276_v46 = vrot.slane %v1254_v16, %v3066_v58  ;;  %v3484_v52 = vpop.permute.xlu1 %983  ;;  %v1842_v1 = vrot.slane %v1832_v14, %v3066_v58 }
 0x2e8   : > { %v1815_v56 = vpack.c.bf16 %v1812_v11, %v1763_v9  ;;  %v1283_v6 = vrot.slane %v1255_v47, %v3066_v58  ;;  %v1284_v33 = vcombine.low %v1262_v53, %v1269_v41 }
 0x2ea   : > { %v2107_v57 = vsel %vm2102_vm5, %v1815_v56, 0  ;;  %v1285_v36 = vcombine.low %v1276_v46, %v1283_v6  ;;  %v1292_v48 = vrot.slane %v1284_v33, %v3066_v58 }
 0x2eb   : > { %2708 = vmatpush3.bf16.xpose.msra.mxu0 %v2107_v57  ;;  %v3486_v51 = vpop.permute.xlu1 %985 }
 0x2ec   : > { %v1299_v39 = vrot.slane %v1285_v36, %v3066_v58  ;;  %2719 = vmatprep.subr.bf16.mxu0 %v3757_v17  ;;  %v1833_v0 = vcombine.low %v3484_v52, %v3486_v51 }
 0x2ee   : > { %v1300_v31 = vcombine.low %v1292_v48, %v1299_v39  ;;  %v1849_v8 = vrot.slane %v1833_v0, %v3066_v58 }
 0x2ef   : > { %v3492_v44 = vpop.permute.xlu1 %987 }
 0x2f0   : > { %v1302_v29 = vpack.c.bf16 %v1300_v31, %v1300_v31  ;;  %v1864_v27 = vcombine.low %v1842_v1, %v1849_v8 }
 0x2f2   : > { %2710 = vmatmul.mubr.msk.bf16.vlgmr.msra.gmra.mrb[4].mxu0 %vm2102_vm5, %v1302_v29  ;;  %v1872_v13 = vrot.slane %v1864_v27, %v3066_v58 }
 0x2f3   : > { %2721 = vmatprep.mubr.msk.bf16.mxu0 %vm2857_vm1, %v3757_v17  ;;  %v3494_v54 = vpop.permute.xlu1 %989 }
 0x2f4   : > { %v1834_v5 = vcombine.low %v3492_v44, %v3494_v54 }
 0x2f6   : > { %v1856_v12 = vrot.slane %v1834_v5, %v3066_v58 }
 0x2f7   : > { %v3497_v23 = vpop.permute.xlu1 %991 }
 0x2f8   : > { %v1835_v18 = vcombine.low %v3497_v23, %v3499_v10 }
 0x2fa   : > { %v1863_v62 = vrot.slane %v1835_v18, %v3066_v58 }
 0x2fb   : > { %v3521_v16 = vpop.permute.xlu1 %995 }
 0x2fc   : > { %v1865_v25 = vcombine.low %v1856_v12, %v1863_v62 }
 0x2fe   : > { %v1879_v21 = vrot.slane %v1865_v25, %v3066_v58 }
 0x2ff   : > { %v3523_v50 = vpop.permute.xlu1 %997 }
 0x300   : > { %v1880_v20 = vcombine.low %v1872_v13, %v1879_v21  ;;  %v1881_v56 = vcombine.low %v3521_v16, %v3523_v50 }
 0x302   : > { %v1891_v31 = vrot.slane %v1881_v56, %v3066_v58 }
 0x303   : > { %v3525_v47 = vpop.permute.xlu1 %999 }
 0x307   : > { %v3527_v53 = vpop.permute.xlu1 %1001 }
 0x308   : > { %v1882_v11 = vcombine.low %v3525_v47, %v3527_v53 }
 0x30a   : > { %v1898_v33 = vrot.slane %v1882_v11, %v3066_v58 }
 0x30b   : > { %v3529_v41 = vpop.permute.xlu1 %1003 }
 0x3c5   : > { %v2143_v19 = vpop.f32.mrb[4].mxu0 }
 0x3c6   : > { %v2144_v9 = vadd.f32 %v2667_v28, %v2143_v19  ;;  %v2711_v45 = vpop.f32.mrb[5].mxu0  ;;  %v1913_v28 = vcombine.low %v1891_v31, %v1898_v33  ;;  %v1817_v33 = vmul.f32 %v3285_v7, %v3482_v22 }
 0x3c7   : > { %v2146_v24 = vpop.f32.mrb[6].mxu0 }
 0x3c8   : > { %v2712_v15 = vpop.f32.mrb[7].mxu0  ;;  %v2150_v38 = vsel %vm2149_vm6, %v2144_v9, -inf }
 0x3c9   : > { %2151 = vmax.xlane.f32.xlu0 %v2150_v38  ;;  %v1921_v15 = vrot.slane %v1913_v28, %v3066_v58  ;;  %v1819_v28 = vmul.f32 %v3334_v49, %v3486_v51 }
 0x3df   : > { %1007 = vrot.lane.b32.xlu0 %v3352_v2, %s2863_s27  ;;  %v3531_v2 = vpop.permute.xlu1 %1005  ;;  %s3659_s27 = scalar_lea.hbm %s3717_s15, %s2673_s26 }
 0x3e0   : > { %v1883_v57 = vcombine.low %v3529_v41, %v3531_v2 }
 0x3e2   : > { %v1905_v19 = vrot.slane %v1883_v57, %v3066_v58 }
 0x3e3   : > { %1930 = vrot.lane.b32.xlu0 %v1880_v20, %s2860_s1  ;;  %v3540_v48 = vpop.permute.xlu1 %1009 }
 0x3e7   : > { %1936 = vrot.lane.b32.xlu0 %v1880_v20, %s3758_s30 }
 0x3eb   : > { %1946 = vrot.lane.b32.xlu0 %v1880_v20, %s3759_s29 }
 0x3ef   : > { %1952 = vrot.lane.b32.xlu0 %v1880_v20, %s3760_s20 }
 0x456   : > { %v2152_v46 = vpop.xlane.xlu0 %2151 }
 0x457   : > { %v2153_v6 = vsub.f32 %v2144_v9, %v2152_v46 }
 0x459   : > { %v2154_v36 = vmul.f32 1.442695, %v2153_v6  ;;  %v1816_v6 = vmul.f32 %v3280_v4, %v3480_v26  ;;  %v1821_v4 = vmul.f32 %v3277_v3, %v3494_v54 }
 0x45a   : > { %v3542_v39 = vpop.permute.xlu0 %1007 }
 0x45b   : > { %2787 = vpow2.f32 %v2154_v36  ;;  %v1884_v29 = vcombine.low %v3542_v39, %v3540_v48 }
 0x45d   : > { %v1912_v9 = vrot.slane %v1884_v29, %v3066_v58  ;;  %v1818_v29 = vmul.f32 %v3323_v43, %v3484_v52  ;;  %v1822_v43 = vmul.f32 %v3293_v30, %v3497_v23 }
 0x45e   : > { %v1931_v45 = vpop.permute.xlu0 %1930 }
 0x45f   : > { %v1914_v24 = vcombine.low %v1905_v19, %v1912_v9  ;;  %v1820_v19 = vmul.f32 %v3251_v55, %v3492_v44 }
 0x461   : > { %v1928_v38 = vrot.slane %v1914_v24, %v3066_v58 }
 0x462   : > { %v1937_v18 = vpop.permute.xlu0 %1936 }
 0x463   : > { %v1929_v0 = vcombine.low %v1921_v15, %v1928_v38  ;;  %v1942_v8 = vsel %vm1163_vm2, %v1931_v45, %v1937_v18  ;;  %v1823_v45 = vmul.f32 %v3319_v42, %v3499_v10 }
 0x464   : > { %v1944_v12 = vsub.f32 0.0, %v1942_v8 }
 0x465   : > { %v3551_v5 = vpop.eup %2787  ;;  %1932 = vrot.lane.b32.xlu1 %v1929_v0, %s2860_s1 }
 0x466   : > { %v1947_v14 = vpop.permute.xlu0 %1946  ;;  %v2156_v62 = vsel %vm2149_vm6, %v3551_v5, 0.0 }
 0x467   : > { %2157 = vadd.xlane.f32.xlu0 %v2156_v62 }
 0x469   : > { %1938 = vrot.lane.b32.xlu1 %v1929_v0, %s3758_s30 }
 0x46a   : > { %v1953_v1 = vpop.permute.xlu0 %1952 }
 0x46b   : > { %v1958_v25 = vsel %vm1172_vm3, %v1947_v14, %v1953_v1 }
 0x46c   : > { %v1960_v27 = vsel %vm3295_vm4, %v1944_v12, %v1958_v25 }
 0x46d   : > { %v1962_v21 = vmul.f32 %v1960_v27, %v3310_v37  ;;  %1948 = vrot.lane.b32.xlu1 %v1929_v0, %s3759_s29 }
 0x46f   : > { %v1966_v13 = vcombine.high %v1962_v21, %v1962_v21  ;;  %v1973_v20 = vrot.slane %v1962_v21, %v3066_v58 }
 0x471   : > { %v1980_v11 = vrot.slane %v1966_v13, %v3066_v58  ;;  %v1981_v46 = vcombine.high %v1973_v20, %v1973_v20  ;;  %v1989_v56 = vrot.slane %v1973_v20, %v3066_v58  ;;  %1954 = vrot.lane.b32.xlu1 %v1929_v0, %s3760_s20 }
 0x473   : > { %v1982_v57 = vcombine.high %v1980_v11, %v1980_v11  ;;  %v1996_v37 = vrot.slane %v1980_v11, %v3066_v58  ;;  %v2003_v36 = vrot.slane %v1981_v46, %v3066_v58  ;;  %v2011_v31 = vcombine.high %v1989_v56, %v1989_v56 }
 0x474   : > { %v2080_v52 = vadd.f32 %v1989_v56, %v1816_v6 }
 0x475   : > { %v2010_v7 = vrot.slane %v1982_v57, %v3066_v58  ;;  %v2012_v26 = vcombine.high %v1996_v37, %v1996_v37  ;;  %v2013_v22 = vcombine.high %v2003_v36, %v2003_v36  ;;  %v2081_v9 = vadd.f32 %v2003_v36, %v1817_v33 }
 0x476   : > { %v2082_v24 = vadd.f32 %v2011_v31, %v1818_v29  ;;  %v2084_v15 = vadd.f32 %v1996_v37, %v1820_v19  ;;  %v1824_v29 = vmul.f32 %v3257_v59, %v3521_v16  ;;  %v3762_v59 = vld [vmem:[#allocation12_spill] sm:$0xff] }
 0x477   : > { %v2014_v49 = vcombine.high %v2010_v7, %v2010_v7  ;;  %v2083_v51 = vadd.f32 %v2013_v22, %v1819_v28  ;;  %v2085_v55 = vadd.f32 %v2010_v7, %v1821_v4  ;;  %v2178_v44 = vcombine.low %v2080_v52, %v2081_v9  ;;  %v3761_v9 = vld [vmem:[#allocation11_spill] sm:$0xff] }
 0x478   : > { %v2086_v38 = vadd.f32 %v2012_v26, %v1822_v43  ;;  %v1825_v28 = vmul.f32 %v3260_v60, %v3523_v50  ;;  %v1826_v26 = vmul.f32 %v3303_v34, %v3525_v47  ;;  %v1827_v22 = vmul.f32 %v3307_v35, %v3527_v53 }
 0x479   : > { %v2087_v3 = vadd.f32 %v2014_v49, %v1823_v45  ;;  %v2179_v54 = vcombine.low %v2082_v24, %v2083_v51  ;;  %v2180_v18 = vcombine.low %v2084_v15, %v2085_v55  ;;  %v2188_v14 = vrot.slane %v2178_v44, %v3066_v58  ;;  %v3763_v24 = vld [vmem:[#allocation13_spill] sm:$0xff] }
 0x47a   : > { %v1828_v45 = vmul.f32 %v3761_v9, %v3529_v41  ;;  %v1829_v16 = vmul.f32 %v3762_v59, %v3531_v2  ;;  %v1831_v49 = vmul.f32 %v3763_v24, %v3540_v48  ;;  %v1830_v34 = vmul.f32 %v3264_v61, %v3542_v39 }
 0x47b   : > { %v2181_v0 = vcombine.low %v2086_v38, %v2087_v3  ;;  %v2195_v62 = vrot.slane %v2179_v54, %v3066_v58  ;;  %v2202_v42 = vrot.slane %v2180_v18, %v3066_v58 }
 0x47d   : > { %v2209_v30 = vrot.slane %v2181_v0, %v3066_v58  ;;  %v2210_v23 = vcombine.low %v2188_v14, %v2195_v62 }
 0x47f   : > { %v2211_v10 = vcombine.low %v2202_v42, %v2209_v30  ;;  %v2218_v8 = vrot.slane %v2210_v23, %v3066_v58 }
 0x481   : > { %v2225_v12 = vrot.slane %v2211_v10, %v3066_v58 }
 0x483   : > { %v2226_v1 = vcombine.low %v2218_v8, %v2225_v12 }
 0x4d7   : > { %v1933_v25 = vpop.permute.xlu1 %1932 }
 0x4db   : > { %v1939_v27 = vpop.permute.xlu1 %1938 }
 0x4dc   : > { %v1943_v13 = vsel %vm1163_vm2, %v1933_v25, %v1939_v27 }
 0x4dd   : > { %v1945_v20 = vsub.f32 0.0, %v1943_v13 }
 0x4df   : > { %v1949_v21 = vpop.permute.xlu1 %1948 }
 0x4e3   : > { %v1955_v11 = vpop.permute.xlu1 %1954 }
 0x4e4   : > { %v1959_v46 = vsel %vm1172_vm3, %v1949_v21, %v1955_v11 }
 0x4e5   : > { %v1961_v56 = vsel %vm3295_vm4, %v1945_v20, %v1959_v46  ;;  %v2864_v46 = vmov 1983009808  }
 0x4e6   : > { %v1963_v6 = vmul.f32 %v1961_v56, %v3381_v63  ;;  %v2344_v56 = vunpack.c.l.s4 %v2864_v46  ;;  %v2671_v46 = vld [vmem:[%s3716_s14] ss:$0 sm:$0xff] }
 0x4e8   : > { %v2015_v33 = vcombine.high %v1963_v6, %v1963_v6  ;;  %v2022_v57 = vrot.slane %v1963_v6, %v3066_v58 }
 0x4ea   : > { %v2029_v37 = vrot.slane %v2015_v33, %v3066_v58  ;;  %v2030_v36 = vcombine.high %v2022_v57, %v2022_v57  ;;  %v2038_v31 = vrot.slane %v2022_v57, %v3066_v58  ;;  %v2865_v57 = vmov 1934713408  }
 0x4ec   : > { %v2031_v19 = vcombine.high %v2029_v37, %v2029_v37  ;;  %v2045_v4 = vrot.slane %v2029_v37, %v3066_v58  ;;  %v2052_v7 = vrot.slane %v2030_v36, %v3066_v58  ;;  %v2060_v63 = vcombine.high %v2038_v31, %v2038_v31 }
 0x4ed   : > { %v2088_v47 = vadd.f32 %v2038_v31, %v1824_v29  ;;  %v2359_v37 = vunpack.c.l.s4 %v2865_v57  ;;  %v2345_v36 = vunpack.c.0.s8 %v2344_v56  ;;  %v2791_v56 = vld [vmem:[%s3013_s24] sm:$0xff]  ;;  %s2866_s24 = smov [#allocation2]  }
 0x4ee   : > { %v2059_v60 = vrot.slane %v2031_v19, %v3066_v58  ;;  %v2061_v50 = vcombine.high %v2045_v4, %v2045_v4  ;;  %v2062_v43 = vcombine.high %v2052_v7, %v2052_v7  ;;  %v2089_v52 = vadd.f32 %v2052_v7, %v1825_v28  ;;  %v3764_v7 = vld [vmem:[#allocation10_spill] sm:$0xff] }
 0x4ef   : > { %v2090_v51 = vadd.f32 %v2060_v63, %v1826_v26  ;;  %v2092_v15 = vadd.f32 %v2045_v4, %v1828_v45  ;;  %v2360_v28 = vunpack.c.0.s8 %v2359_v37  ;;  %v3765_v26 = vld [vmem:[#allocation9_spill] sm:$0xff] }
 0x4f0   : > { %v2063_v35 = vcombine.high %v2059_v60, %v2059_v60  ;;  %v2091_v53 = vadd.f32 %v2062_v43, %v1827_v22  ;;  %v2093_v41 = vadd.f32 %v2059_v60, %v1829_v16  ;;  %v2227_v55 = vcombine.low %v2088_v47, %v2089_v52 }
 0x4f1   : > { %v2094_v44 = vadd.f32 %v2061_v50, %v1830_v34  ;;  %v2348_v22 = vsub.s32 %v2345_v36, %v3765_v26  ;;  %v2363_v45 = vsub.s32 %v2360_v28, %v3765_v26 }
 0x4f2   : > { %v2095_v2 = vadd.f32 %v2063_v35, %v1831_v49  ;;  %v2228_v38 = vcombine.low %v2090_v51, %v2091_v53  ;;  %v2229_v3 = vcombine.low %v2092_v15, %v2093_v41  ;;  %v2237_v18 = vrot.slane %v2227_v55, %v3066_v58 }
 0x4f4   : > { %v2230_v54 = vcombine.low %v2094_v44, %v2095_v2  ;;  %v2158_v0 = vpop.xlane.xlu0 %2157  ;;  %v2244_v48 = vrot.slane %v2228_v38, %v3066_v58  ;;  %v2251_v61 = vrot.slane %v2229_v3, %v3066_v58 }
 0x4f5   : > { %2789 = vrcp.f32 %v2158_v0 }
 0x4f6   : > { %v2258_v39 = vrot.slane %v2230_v54, %v3066_v58  ;;  %v2259_v14 = vcombine.low %v2237_v18, %v2244_v48 }
 0x4f8   : > { %v2260_v62 = vcombine.low %v2251_v61, %v2258_v39  ;;  %v2267_v42 = vrot.slane %v2259_v14, %v3066_v58 }
 0x4fa   : > { %v2274_v30 = vrot.slane %v2260_v62, %v3066_v58  ;;  %v2399_v58 = vld [vmem:[%s3715_s13] sm:$0xf] }
 0x4fc   : > { %v2275_v23 = vcombine.low %v2267_v42, %v2274_v30 }
 0x4fe   : > { %v2278_v10 = vpack.c.bf16 %v2275_v23, %v2226_v1 }
 0x4ff   : > { %v2790_v8 = vpop.eup %2789 }
 0x500   : > { %v2160_v12 = vmul.f32 %v2790_v8, %v3551_v5  ;;  %2714 = vmatpush3.bf16.msra.mxu1 %v2278_v10  ;;  %v2443_v5 = vsel %vm2441_vm7, %v2399_v58, 0 }
 0x501   : > { %2720 = vmatpush3.bf16.msra.mxu0 %v2443_v5 }
 0x502   : > { %v2161_v25 = vpack.c.bf16 %v2160_v12, %v2160_v12 }
 0x504   : > { %2716 = vmatmul.mubr.msk.bf16.vlgmr.msra.gmra.mrb[4].mxu1 %vm2149_vm6, %v2161_v25 }
 0x5d7   : > { %v2316_v27 = vpop.f32.mrb[4].mxu1 }
 0x5d8   : > { %2324 = vrot.lane.b32.xlu1 %v2316_v27, %s2860_s1  ;;  %v2717_v21 = vpop.f32.mrb[5].mxu1  ;;  %v2322_v63 = vmul.f32 %v2316_v27, %v3764_v7  ;;  %s565_s1 = sand.u32 1, %s2846_s19  }
 0x5d9   : > { %v2319_v13 = vpop.f32.mrb[6].mxu1  ;;  %s2641_s23 = sshll.u32 %s565_s1, 3  ;;  %s2496_s22 = scalar_lea.sflag [#allocation3], %s565_s1 }
 0x5da   : > { %v2718_v20 = vpop.f32.mrb[7].mxu1  ;;  %s567_s0 = scalar_lea.vmem [#allocation2], %s2641_s23  ;;  %s2796_s23 = sshll.u32 %s2866_s24, 4  ;;  %s2797_s23 = int_to_ptr.vmem [resolvable:$false] %s2796_s23 }
 0x5db   : > { %s2798_s25 = scalar_lea.vmem %s2797_s23, 256 }
 0x5dc   : > { %2327 = vrot.lane.b32.xlu1 %v2316_v27, %s3758_s30  ;;  %s2509_s30 = sshll.u32 %s567_s0, 4  ;;  %s3661_s30 = int_to_ptr.vmem [resolvable:$true] %s2509_s30 }
 0x5dd   : > { %s2792_s16 = scalar_lea.vmem %s3661_s30, 128  ;;  %p2799_p0 = scmp.lt.s32.totalorder %s3661_s30, %s2797_s23 }
 0x5de   : > { %p2793_p11 = scmp.ne.s32.totalorder %s3661_s30, %s2792_s16  ;;  %p2800_p1 = scmp.lt.s32.totalorder %s2798_s25, %s2792_s16 }
 0x5e0   : > { %2332 = vrot.lane.b32.xlu1 %v2316_v27, %s3759_s29  ;;  %p2794_p12 = pnand %p2793_p11, %p2985_p5  ;;  %p2801_p2 = por %p2800_p1, %p2799_p0 }
 0x5e2   : > { %p2795_p13 = pneg %p2794_p12 }
 0x5e4   : > { %2335 = vrot.lane.b32.xlu1 %v2316_v27, %s3760_s20  ;;  %p2802_p3 = pnand %p2801_p2, %p2795_p13 }
 0x64a   : > { %v2325_v1 = vpop.permute.xlu1 %2324 }
 0x64e   : > { %v2328_v11 = vpop.permute.xlu1 %2327 }
 0x64f   : > { %v2330_v33 = vsel %vm1163_vm2, %v2325_v1, %v2328_v11 }
 0x650   : > { %v2331_v31 = vsub.f32 0.0, %v2330_v33 }
 0x652   : > { %v2333_v6 = vpop.permute.xlu1 %2332 }
 0x656   : > { %v2336_v29 = vpop.permute.xlu1 %2335 }
 0x657   : > { %v2338_v19 = vsel %vm1172_vm3, %v2333_v6, %v2336_v29 }
 0x658   : > { %v2339_v4 = vsel %vm3295_vm4, %v2331_v31, %v2338_v19 }
 0x659   : > { %v2340_v9 = vmul.f32 %v2339_v4, %v3422_v40 }
 0x65b   : > { %v2341_v59 = vsub.f32 %v2322_v63, %v2340_v9 }
 0x65d   : > { %v2342_v16 = vcombine.high %v2341_v59, %v3757_v17  ;;  %v2349_v60 = vrot.slane %v2341_v59, %v2348_v22 }
 0x65f   : > { %v2356_v50 = vrot.slane %v2342_v16, %v2348_v22  ;;  %v2357_v43 = vcombine.high %v2349_v60, %v3757_v17  ;;  %v2364_v52 = vrot.slane %v2349_v60, %v2363_v45 }
 0x661   : > { %v2371_v24 = vrot.slane %v2357_v43, %v2363_v45  ;;  %v2372_v32 = vcombine.high %v2356_v50, %v3757_v17  ;;  %v2379_v49 = vrot.slane %v2356_v50, %v2363_v45  ;;  %v2387_v34 = vcombine.high %v2364_v52, %v3757_v17 }
 0x662   : > { %v2391_v53 = vpack.c.bf16 %v2364_v52, %v2364_v52 }
 0x663   : > { %v2386_v47 = vrot.slane %v2372_v32, %v2363_v45  ;;  %v2388_v51 = vcombine.high %v2371_v24, %v3757_v17  ;;  %v2389_v40 = vcombine.high %v2379_v49, %v3757_v17  ;;  %v2392_v35 = vpack.c.bf16 %v2387_v34, %v2387_v34 }
 0x664   : > { %v2393_v15 = vpack.c.bf16 %v2371_v24, %v2371_v24  ;;  %v2395_v41 = vpack.c.bf16 %v2379_v49, %v2379_v49  ;;  %v2408_v61 = vunpack.c.l.b16 %v2391_v53 }
 0x665   : > { %v2390_v55 = vcombine.high %v2386_v47, %v3757_v17  ;;  %v2394_v44 = vpack.c.bf16 %v2388_v51, %v2388_v51  ;;  %v2396_v2 = vpack.c.bf16 %v2389_v40, %v2389_v40  ;;  %v2397_v38 = vpack.c.bf16 %v2386_v47, %v2386_v47 }
 0x666   : > { %v2409_v3 = vunpack.c.l.b16 %v2392_v35  ;;  %v2410_v54 = vunpack.c.l.b16 %v2393_v15  ;;  %v2412_v48 = vunpack.c.l.b16 %v2395_v41 }
 0x667   : > { %v2398_v18 = vpack.c.bf16 %v2390_v55, %v2390_v55  ;;  %v2411_v0 = vunpack.c.l.b16 %v2394_v44  ;;  %v2413_v39 = vunpack.c.l.b16 %v2396_v2  ;;  %v2414_v42 = vunpack.c.l.b16 %v2397_v38 }
 0x668   : > { %v2416_v14 = vrot.slane %v2409_v3, 7  ;;  %v2419_v62 = vrot.slane %v2410_v54, 6  ;;  %v2425_v8 = vrot.slane %v2412_v48, 4 }
 0x669   : > { %v2422_v30 = vrot.slane %v2411_v0, 5  ;;  %v2415_v10 = vunpack.c.l.b16 %v2398_v18  ;;  %v2428_v25 = vrot.slane %v2413_v39, 3  ;;  %v2431_v27 = vrot.slane %v2414_v42, 2 }
 0x66a   : > { %v2418_v23 = vsel %vm2417_vm8, %v2416_v14, %v2408_v61 }
 0x66b   : > { %v2421_v17 = vsel %vm2420_vm9, %v2419_v62, %v2418_v23  ;;  %v2434_v20 = vrot.slane %v2415_v10, 1 }
 0x66c   : > { %v2424_v12 = vsel %vm2423_vm10, %v2422_v30, %v2421_v17 }
 0x66d   : > { %v2427_v21 = vsel %vm2426_vm11, %v2425_v8, %v2424_v12 }
 0x66e   : > { %v2430_v13 = vsel %vm2429_vm12, %v2428_v25, %v2427_v21 }
 0x66f   : > { %v2433_v58 = vsel %vm2432_vm13, %v2431_v27, %v2430_v13 }
 0x670   : > { %v2436_v5 = vsel %vm2435_vm14, %v2434_v20, %v2433_v58 }
 0x671   : > { %v2437_v1 = vpack.c.b16 %v2436_v5, %v2436_v5 }
 0x673   : > { %2722 = vmatmul.mubr.msk.bf16.vlgmr.msra.gmra.mrb[8].mxu0 %vm2102_vm5, %v2437_v1 }
 0x746   : > { %v2479_v11 = vpop.f32.mrb[8].mxu0 }
 0x747   : > { %v2485_v6 = vadd.f32 %v2791_v56, %v2479_v11  ;;  %v2723_v33 = vpop.f32.mrb[9].mxu0 }
 0x748   : > { %v2482_v57 = vpop.f32.mrb[10].mxu0 }
 0x749   : > { %v2493_v37 = vadd.f32 %v2671_v46, %v2485_v6  ;;  %v2724_v36 = vpop.f32.mrb[11].mxu0 }
 0x74b   : > { %2494 = vst.msk [vmem:[%s567_s0] sm:$0xff] %vm602_vm0, %v2493_v37 }
 0x74c   : > { %2805 = shalt.err (!%p2802_p3)
}
 0x74d   : > { %s2806_s1 = scalar_lea.hbm %s3659_s27, 128  ;;  %s2810_s0 = scalar_lea.hbm %s3717_s15, 256 }
 0x74e   : > { %p2807_p4 = scmp.ne.s32.totalorder %s3659_s27, %s2806_s1  ;;  %p2811_p9 = scmp.lt.u32.totalorder %s3659_s27, %s3717_s15 }
 0x74f   : > { %p2812_p10 = scmp.lt.u32.totalorder %s2810_s0, %s2806_s1  ;;  %p2814_p12 = scmp.lt.u32.totalorder %s2806_s1, %s3659_s27 }
 0x750   : > { %p2808_p7 = pnand %p2807_p4, %p2985_p5 }
 0x751   : > { %p2813_p11 = por %p2812_p10, %p2811_p9 }
 0x752   : > { %p2809_p8 = pneg %p2808_p7 }
 0x753   : > { %p2815_p13 = por %p2814_p12, %p2813_p11 }
 0x755   : > { %p2816_p0 = pnand %p2815_p13, %p2809_p8 }
 0x757   : > { %2819 = shalt.err (!%p2816_p0)
}
 0x758   : > { %2725 = dma.vmem_to_hbm [thread:$0]  (%p2985_p5), %s3661_s30, 128, %s3659_s27, %s2496_s22  }
 0x759 PF: > { %p2731_p1 = scmp.ge.s32.totalorder %s2854_s21, 2  ;;  %s2521_s24 = sand.u32 1, %s2842_s18  }
 0x75a   : > { %s2522_s23 = scalar_lea.sflag [#allocation3], %s2521_s24 }
 0x75b   : > { %p2728_p2 = pnand %p2731_p1, %p2989_p6 }
 0x75d   : > { %2837 = dma.done.wait (!%p2728_p2), %s2522_s23, 128  }
 0x75e   : > { %2839 = vsyncadd (!%p2728_p2), %s2522_s23, 4294967168  ;;  %s3767_s21 = sld [smem:[#allocation6_spill]]  ;;  %s3768_s25 = sld [smem:[#allocation5_spill]] }
 0x75f   : > { %s3769_s20 = sld [smem:[#allocation7_spill]]  ;;  %s3770_s18 = smov %s2846_s19 }
 0x764   : > { %p25_p3 = scmp.ge.s32.totalorder %s3767_s21, 4   ;;  %s3771_s19 = smov %s3768_s25 }
 0x766   :  { %27 = sbr.rel (!%p25_p3) target bundleno = 6 (0x6), region = 133 }
 0x76d   :  { %2527 = vsyncpa [#allocation3], 1 }
 0x76e   :  { %2529 = vsyncpa [#allocation3 + $0x1], 1 }

</bundles_post_ra>
